<compile_context>
chip_gen: v7x
topology: tpu7x:2x2x1
jax: 0.10.0
libtpu: 0.0.40
codegen_flags: <defaults>
</compile_context>

<pallas_src>
import functools

import jax
import jax.numpy as jnp
from jax import lax
from jax.experimental import pallas as pl
from jax.experimental.pallas import tpu as pltpu

OBS0, OBS1 = 8, 8          # observation slice widths for node 0 / node 1
H, OUT = 16, 16            # hidden width / final output width
NMOD0, NMOD1 = 2, 2        # modules per node
D_IN = OBS0 + OBS1 + NMOD0 + NMOD1   # 20

# ---- packed parameter slab layout: (SLAB_ROWS, SLAB_LANES) f32, weights + biases ----
SLAB_LANES = NMOD0 * H     # 32  (== NMOD1*H == NMOD1*OUT -> no lane padding anywhere)
R_W01 = 0                  # (OBS0, 32)  node-0 layer 1, modules stacked on lanes
R_W02 = R_W01 + OBS0       # (H,    32)  node-0 layer 2
R_W1P = R_W02 + H          # (OBS1, 32)  node-1 pre-interface
R_W1QT = R_W1P + OBS1      # (H,    32)  node-1 post-interface rows multiplying node-0 out
R_W1QB = R_W1QT + H        # (H,    32)  node-1 post-interface rows multiplying pre
R_B01 = R_W1QB + H         # 4 bias rows follow
R_B02 = R_B01 + 1
R_B1P = R_B02 + 1
R_B1Q = R_B1P + 1
SLAB_ROWS = 72             # 68 useful rows padded to a sublane (8) multiple

SUB_ROWS = 128             # in-kernel compute sub-chunk (bounds vreg live ranges)
MAX_TILE_B = 2048          # per-grid-step DMA tile cap (~0.2 MB in+out, far under VMEM)


def _blend(blocks, onehot, nmod, width):
    """Select the per-sample module block from lane-stacked module results."""
    acc = onehot[:, 0:1] * blocks[:, 0:width]
    for m in range(1, nmod):
        acc = acc + onehot[:, m:m + 1] * blocks[:, m * width:(m + 1) * width]
    return acc


def comp_mlp_kernel(x_ref, w_ref, o_ref, *, sub_rows, n_sub, dot_dtype):
    # --- resident packed parameters (loaded once per grid step, hoisted out of the loop) ---
    w01 = w_ref[R_W01:R_W01 + OBS0, :].astype(dot_dtype)      # (8, 32)
    w02 = w_ref[R_W02:R_W02 + H, :].astype(dot_dtype)         # (16, 32)
    w1p = w_ref[R_W1P:R_W1P + OBS1, :].astype(dot_dtype)      # (8, 32)
    w1qt = w_ref[R_W1QT:R_W1QT + H, :].astype(dot_dtype)      # (16, 32)
    w1qb = w_ref[R_W1QB:R_W1QB + H, :].astype(dot_dtype)      # (16, 32)
    b01 = w_ref[R_B01:R_B01 + 1, :]                           # biases stay f32
    b02 = w_ref[R_B02:R_B02 + 1, :]
    b1p = w_ref[R_B1P:R_B1P + 1, :]
    b1q = w_ref[R_B1Q:R_B1Q + 1, :]

    def compute(x):                                           # x: (rows, D_IN) f32
        obs0 = x[:, 0:OBS0]                                   # module_inputs[0]
        obs1 = x[:, OBS0:OBS0 + OBS1]                         # module_inputs[1]
        oh0 = x[:, OBS0 + OBS1:OBS0 + OBS1 + NMOD0]           # one-hot selector, node 0
        oh1 = x[:, OBS0 + OBS1 + NMOD0:D_IN]                  # one-hot selector, node 1

        # node 0: both modules fused in one lane-stacked matmul per layer, ReLU
        h1 = jnp.maximum(
            jnp.dot(obs0.astype(dot_dtype), w01, preferred_element_type=jnp.float32) + b01, 0.0)
        h1_sel = _blend(h1, oh0, NMOD0, H)
        h2 = jnp.maximum(
            jnp.dot(h1_sel.astype(dot_dtype), w02, preferred_element_type=jnp.float32) + b02, 0.0)
        out0 = _blend(h2, oh0, NMOD0, H)                      # node-0 output (rows, 16)

        # node 1 pre-interface (Linear + ReLU), fused over modules
        pre = jnp.maximum(
            jnp.dot(obs1.astype(dot_dtype), w1p, preferred_element_type=jnp.float32) + b1p, 0.0)
        pre_sel = _blend(pre, oh1, NMOD1, H)                  # (rows, 16)

        # node 1 post-interface (Linear + Identity): concat replaced by split-weight sum,
        # only the 32 useful lanes are produced.
        post = (jnp.dot(out0.astype(dot_dtype), w1qt, preferred_element_type=jnp.float32)
                + jnp.dot(pre_sel.astype(dot_dtype), w1qb, preferred_element_type=jnp.float32)
                + b1q)                                        # (rows, 32)
        return _blend(post, oh1, NMOD1, OUT)                  # (rows, 16)

    if n_sub == 1:
        o_ref[...] = compute(x_ref[...])
    else:
        # Large DMA tile, small compute chunks: keeps vreg live sets bounded.
        def body(s, carry):
            r = pl.multiple_of(s * sub_rows, sub_rows)
            o_ref[pl.ds(r, sub_rows), :] = compute(x_ref[pl.ds(r, sub_rows), :])
            return carry

        lax.fori_loop(0, n_sub, body, None)


def pack_params(params):
    """Host-side packing of the 8 per-module arrays into one (72, 32) f32 slab."""
    w01, b01, w02, b02, w1p, b1p, w1q, b1q = params

    def stack_mods(w):                                        # (M, in, out) -> (in, M*out)
        return jnp.concatenate([w[m] for m in range(w.shape[0])], axis=-1)

    slab = jnp.concatenate([
        stack_mods(w01),                                      # rows  0: 8
        stack_mods(w02),                                      # rows  8:24
        stack_mods(w1p),                                      # rows 24:32
        stack_mods(w1q[:, :H, :]),                            # rows 32:48 (x node-0 out)
        stack_mods(w1q[:, H:, :]),                            # rows 48:64 (x pre)
        b01.reshape(1, -1),                                   # row 64
        b02.reshape(1, -1),                                   # row 65
        b1p.reshape(1, -1),                                   # row 66
        b1q.reshape(1, -1),                                   # row 67
    ], axis=0).astype(jnp.float32)                            # (68, 32)
    return jnp.pad(slab, ((0, SLAB_ROWS - slab.shape[0]), (0, 0)))  # (72, 32)


def _pick_tile_b(bsz, max_tile=MAX_TILE_B):
    """Largest power-of-two tile (<= max_tile) dividing the batch with >= 2 grid steps
    (v7x has 2 TensorCores; the grid is sharded only along parallel axes).  Falls back
    to a single (possibly padded) tile for tiny / awkward batches."""
    t = max_tile
    while t >= 16:
        if bsz % t == 0 and bsz // t >= 2:
            return t
        t //= 2
    if bsz % 8 == 0 and bsz // 8 >= 2:
        return 8
    return ((bsz + 7) // 8) * 8   # single tile covering the whole (sublane-padded) batch


def compositional_mlp_forward(x, params, tile_b=None, dot_dtype=jnp.float32):
    w_slab = pack_params(params)
    bsz = x.shape[0]
    if tile_b is None:
        tile_b = _pick_tile_b(bsz)
    n_tiles = pl.cdiv(bsz, tile_b)
    b_pad = n_tiles * tile_b
    if b_pad != bsz:
        # Only hit for batches with no clean power-of-two divisor.
        # TODO(synk): mask the ragged last tile in-kernel to avoid this extra HBM pass.
        x = jnp.pad(x, ((0, b_pad - bsz), (0, 0)))

    sub_rows = min(SUB_ROWS, tile_b)
    n_sub = tile_b // sub_rows
    kernel = functools.partial(comp_mlp_kernel, sub_rows=sub_rows, n_sub=n_sub,
                               dot_dtype=dot_dtype)

    flops = 2 * b_pad * (OBS0 * NMOD0 * H + H * NMOD0 * H + OBS1 * NMOD1 * H
                         + 2 * H * NMOD1 * OUT)
    bytes_accessed = (b_pad * D_IN + SLAB_ROWS * SLAB_LANES + b_pad * OUT) * 4

    out = pl.pallas_call(
        kernel,
        out_shape=jax.ShapeDtypeStruct((b_pad, OUT), jnp.float32),
        grid_spec=pltpu.PrefetchScalarGridSpec(
            num_scalar_prefetch=0,
            grid=(n_tiles,),
            in_specs=[
                pl.BlockSpec((tile_b, D_IN), lambda i: (i, 0)),          # batch-tiled input
                pl.BlockSpec((SLAB_ROWS, SLAB_LANES), lambda i: (0, 0)),  # resident param slab
            ],
            out_specs=pl.BlockSpec((tile_b, OUT), lambda i: (i, 0)),     # un-padded output
        ),
        compiler_params=pltpu.CompilerParams(
            dimension_semantics=("parallel",),            # shard batch tiles across TCs (v7x)
        ),
        cost_estimate=pl.CostEstimate(
            flops=flops, transcendentals=0, bytes_accessed=bytes_accessed),
    )(x, w_slab)
    return out if b_pad == bsz else out[:bsz]


def init_params(key):
    """Deterministic init mirroring the module's __init__ (fanin_init / b=0.1 / init_w)."""
    ks = jax.random.split(key, 5)
    init_w = 0.003
    b_init = 0.1

    def fanin_uniform(k, shape, fan_in):
        bound = 1.0 / jnp.sqrt(jnp.float32(fan_in))
        return jax.random.uniform(k, shape, jnp.float32, -bound, bound)

    w01 = fanin_uniform(ks[0], (NMOD0, OBS0, H), H)       # torch fanin uses weight.size(0)=out
    b01 = jnp.full((NMOD0, H), b_init, jnp.float32)
    w02 = fanin_uniform(ks[1], (NMOD0, H, H), H)
    b02 = jnp.full((NMOD0, H), b_init, jnp.float32)
    w1p = fanin_uniform(ks[2], (NMOD1, OBS1, H), H)
    b1p = jnp.full((NMOD1, H), b_init, jnp.float32)
    w1q = jax.random.uniform(ks[3], (NMOD1, H + H, OUT), jnp.float32, -init_w, init_w)
    b1q = jax.random.uniform(ks[4], (NMOD1, OUT), jnp.float32, -init_w, init_w)
    return (w01, b01, w02, b02, w1p, b1p, w1q, b1q)


def reference_forward(x, params):
    """Pure-JAX reference mimicking torch's per-sample module gather/scatter routing."""
    w01, b01, w02, b02, w1p, b1p, w1q, b1q = params
    obs0 = x[:, :OBS0]
    obs1 = x[:, OBS0:OBS0 + OBS1]
    oh0 = x[:, OBS0 + OBS1:OBS0 + OBS1 + NMOD0]
    oh1 = x[:, OBS0 + OBS1 + NMOD0:]
    m0 = jnp.argmax(oh0, axis=-1)
    m1 = jnp.argmax(oh1, axis=-1)
    h = jnp.maximum(jnp.einsum('bi,bio->bo', obs0, w01[m0]) + b01[m0], 0.0)
    h = jnp.maximum(jnp.einsum('bi,bio->bo', h, w02[m0]) + b02[m0], 0.0)
    pre = jnp.maximum(jnp.einsum('bi,bio->bo', obs1, w1p[m1]) + b1p[m1], 0.0)
    cat = jnp.concatenate([h, pre], axis=-1)
    return jnp.einsum('bi,bio->bo', cat, w1q[m1]) + b1q[m1]


if __name__ == "__main__":
    key = jax.random.PRNGKey(0)
    kp, kx, k0, k1 = jax.random.split(key, 4)
    params = init_params(kp)

    B = 256   # small, but enough for a 2-step batch grid (auto tile_b=128)
    obs = jax.random.normal(kx, (B, OBS0 + OBS1), jnp.float32)
    idx0 = jax.random.randint(k0, (B,), 0, NMOD0)
    idx1 = jax.random.randint(k1, (B,), 0, NMOD1)
    x = jnp.concatenate(
        [obs,
         jax.nn.one_hot(idx0, NMOD0, dtype=jnp.float32),
         jax.nn.one_hot(idx1, NMOD1, dtype=jnp.float32)], axis=-1)    # (B, 20)

    ref = reference_forward(x, params)

    # default path: auto tile_b (=128 here -> 2 grid steps, single-chunk body)
    out = jax.block_until_ready(compositional_mlp_forward(x, params))
    assert out.shape == (B, OUT)
    assert jnp.allclose(out, ref, atol=1e-5, rtol=1e-5), "kernel does not match reference"

    # large-tile path: forces the in-kernel sub-chunk loop (tile_b=256, sub_rows=128, n_sub=2)
    out2 = jax.block_until_ready(compositional_mlp_forward(x, params, tile_b=256))
    assert jnp.allclose(out2, ref, atol=1e-5, rtol=1e-5), "sub-chunked kernel mismatch"

    print("KERNEL_OK")
</pallas_src>

<mosaic_0001>
module attributes {stable_mosaic.version = 11 : i64} {
  func.func @comp_mlp_kernel(%arg0: i32, %arg1: memref<128x20xf32, #tpu.memory_space<vmem>>, %arg2: memref<72x32xf32, #tpu.memory_space<vmem>>, %arg3: memref<128x16xf32, #tpu.memory_space<vmem>>) attributes {dimension_semantics = [#tpu.dimension_semantics<parallel>], iteration_bounds = array<i64: 2>, scalar_prefetch = 0 : i64, scratch_operands = 0 : i64, tpu.core_type = #tpu.core_type<tc>, window_params = [{transform_indices = @transform_0, window_bounds = array<i64: 128, 20>}, {pipeline_mode = #tpu.pipeline_mode<synchronous>, transform_indices = @transform_1, window_bounds = array<i64: 72, 32>}, {transform_indices = @transform_2, window_bounds = array<i64: 128, 16>}]} {
    %c0 = arith.constant 0 : index
    %c0_0 = arith.constant 0 : index
    %0 = vector.load %arg2[%c0, %c0_0] : memref<72x32xf32, #tpu.memory_space<vmem>>, vector<8x32xf32>
    %c8 = arith.constant 8 : index
    %c0_1 = arith.constant 0 : index
    %1 = vector.load %arg2[%c8, %c0_1] : memref<72x32xf32, #tpu.memory_space<vmem>>, vector<16x32xf32>
    %c24 = arith.constant 24 : index
    %c0_2 = arith.constant 0 : index
    %2 = vector.load %arg2[%c24, %c0_2] : memref<72x32xf32, #tpu.memory_space<vmem>>, vector<8x32xf32>
    %c32 = arith.constant 32 : index
    %c0_3 = arith.constant 0 : index
    %3 = vector.load %arg2[%c32, %c0_3] : memref<72x32xf32, #tpu.memory_space<vmem>>, vector<16x32xf32>
    %c48 = arith.constant 48 : index
    %c0_4 = arith.constant 0 : index
    %4 = vector.load %arg2[%c48, %c0_4] : memref<72x32xf32, #tpu.memory_space<vmem>>, vector<16x32xf32>
    %c64 = arith.constant 64 : index
    %c0_5 = arith.constant 0 : index
    %5 = vector.load %arg2[%c64, %c0_5] : memref<72x32xf32, #tpu.memory_space<vmem>>, vector<1x32xf32>
    %c65 = arith.constant 65 : index
    %c0_6 = arith.constant 0 : index
    %6 = vector.load %arg2[%c65, %c0_6] : memref<72x32xf32, #tpu.memory_space<vmem>>, vector<1x32xf32>
    %c66 = arith.constant 66 : index
    %c0_7 = arith.constant 0 : index
    %7 = vector.load %arg2[%c66, %c0_7] : memref<72x32xf32, #tpu.memory_space<vmem>>, vector<1x32xf32>
    %c67 = arith.constant 67 : index
    %c0_8 = arith.constant 0 : index
    %8 = vector.load %arg2[%c67, %c0_8] : memref<72x32xf32, #tpu.memory_space<vmem>>, vector<1x32xf32>
    %c0_9 = arith.constant 0 : index
    %c0_10 = arith.constant 0 : index
    %9 = vector.load %arg1[%c0_9, %c0_10] : memref<128x20xf32, #tpu.memory_space<vmem>>, vector<128x20xf32>
    %10 = vector.extract_strided_slice %9 {offsets = [0, 0], sizes = [128, 8], strides = [1, 1]} : vector<128x20xf32> to vector<128x8xf32>
    %11 = vector.extract_strided_slice %9 {offsets = [0, 8], sizes = [128, 8], strides = [1, 1]} : vector<128x20xf32> to vector<128x8xf32>
    %12 = vector.extract_strided_slice %9 {offsets = [0, 16], sizes = [128, 2], strides = [1, 1]} : vector<128x20xf32> to vector<128x2xf32>
    %13 = vector.extract_strided_slice %9 {offsets = [0, 18], sizes = [128, 2], strides = [1, 1]} : vector<128x20xf32> to vector<128x2xf32>
    %cst = arith.constant dense<0.000000e+00> : vector<128x32xf32>
    %14 = tpu.matmul %10, %0, %cst {dimension_numbers = #tpu.dot_dimension_numbers<[1], [0], [0], [1], [0, 0, 1, 1], [], []>} : vector<128x8xf32>, vector<8x32xf32>, vector<128x32xf32> -> vector<128x32xf32>
    %15 = vector.broadcast %5 : vector<1x32xf32> to vector<128x32xf32>
    %16 = arith.addf %14, %15 : vector<128x32xf32>
    %cst_11 = arith.constant 0.000000e+00 : f32
    %17 = vector.broadcast %cst_11 : f32 to vector<128x32xf32>
    %18 = arith.maximumf %16, %17 : vector<128x32xf32>
    %19 = vector.extract_strided_slice %12 {offsets = [0, 0], sizes = [128, 1], strides = [1, 1]} : vector<128x2xf32> to vector<128x1xf32>
    %20 = vector.extract_strided_slice %18 {offsets = [0, 0], sizes = [128, 16], strides = [1, 1]} : vector<128x32xf32> to vector<128x16xf32>
    %21 = vector.broadcast %19 : vector<128x1xf32> to vector<128x16xf32>
    %22 = arith.mulf %21, %20 : vector<128x16xf32>
    %23 = vector.extract_strided_slice %12 {offsets = [0, 1], sizes = [128, 1], strides = [1, 1]} : vector<128x2xf32> to vector<128x1xf32>
    %24 = vector.extract_strided_slice %18 {offsets = [0, 16], sizes = [128, 16], strides = [1, 1]} : vector<128x32xf32> to vector<128x16xf32>
    %25 = vector.broadcast %23 : vector<128x1xf32> to vector<128x16xf32>
    %26 = arith.mulf %25, %24 : vector<128x16xf32>
    %27 = arith.addf %22, %26 : vector<128x16xf32>
    %cst_12 = arith.constant dense<0.000000e+00> : vector<128x32xf32>
    %28 = tpu.matmul %27, %1, %cst_12 {dimension_numbers = #tpu.dot_dimension_numbers<[1], [0], [0], [1], [0, 0, 1, 1], [], []>} : vector<128x16xf32>, vector<16x32xf32>, vector<128x32xf32> -> vector<128x32xf32>
    %29 = vector.broadcast %6 : vector<1x32xf32> to vector<128x32xf32>
    %30 = arith.addf %28, %29 : vector<128x32xf32>
    %cst_13 = arith.constant 0.000000e+00 : f32
    %31 = vector.broadcast %cst_13 : f32 to vector<128x32xf32>
    %32 = arith.maximumf %30, %31 : vector<128x32xf32>
    %33 = vector.extract_strided_slice %12 {offsets = [0, 0], sizes = [128, 1], strides = [1, 1]} : vector<128x2xf32> to vector<128x1xf32>
    %34 = vector.extract_strided_slice %32 {offsets = [0, 0], sizes = [128, 16], strides = [1, 1]} : vector<128x32xf32> to vector<128x16xf32>
    %35 = vector.broadcast %33 : vector<128x1xf32> to vector<128x16xf32>
    %36 = arith.mulf %35, %34 : vector<128x16xf32>
    %37 = vector.extract_strided_slice %12 {offsets = [0, 1], sizes = [128, 1], strides = [1, 1]} : vector<128x2xf32> to vector<128x1xf32>
    %38 = vector.extract_strided_slice %32 {offsets = [0, 16], sizes = [128, 16], strides = [1, 1]} : vector<128x32xf32> to vector<128x16xf32>
    %39 = vector.broadcast %37 : vector<128x1xf32> to vector<128x16xf32>
    %40 = arith.mulf %39, %38 : vector<128x16xf32>
    %41 = arith.addf %36, %40 : vector<128x16xf32>
    %cst_14 = arith.constant dense<0.000000e+00> : vector<128x32xf32>
    %42 = tpu.matmul %11, %2, %cst_14 {dimension_numbers = #tpu.dot_dimension_numbers<[1], [0], [0], [1], [0, 0, 1, 1], [], []>} : vector<128x8xf32>, vector<8x32xf32>, vector<128x32xf32> -> vector<128x32xf32>
    %43 = vector.broadcast %7 : vector<1x32xf32> to vector<128x32xf32>
    %44 = arith.addf %42, %43 : vector<128x32xf32>
    %cst_15 = arith.constant 0.000000e+00 : f32
    %45 = vector.broadcast %cst_15 : f32 to vector<128x32xf32>
    %46 = arith.maximumf %44, %45 : vector<128x32xf32>
    %47 = vector.extract_strided_slice %13 {offsets = [0, 0], sizes = [128, 1], strides = [1, 1]} : vector<128x2xf32> to vector<128x1xf32>
    %48 = vector.extract_strided_slice %46 {offsets = [0, 0], sizes = [128, 16], strides = [1, 1]} : vector<128x32xf32> to vector<128x16xf32>
    %49 = vector.broadcast %47 : vector<128x1xf32> to vector<128x16xf32>
    %50 = arith.mulf %49, %48 : vector<128x16xf32>
    %51 = vector.extract_strided_slice %13 {offsets = [0, 1], sizes = [128, 1], strides = [1, 1]} : vector<128x2xf32> to vector<128x1xf32>
    %52 = vector.extract_strided_slice %46 {offsets = [0, 16], sizes = [128, 16], strides = [1, 1]} : vector<128x32xf32> to vector<128x16xf32>
    %53 = vector.broadcast %51 : vector<128x1xf32> to vector<128x16xf32>
    %54 = arith.mulf %53, %52 : vector<128x16xf32>
    %55 = arith.addf %50, %54 : vector<128x16xf32>
    %cst_16 = arith.constant dense<0.000000e+00> : vector<128x32xf32>
    %56 = tpu.matmul %41, %3, %cst_16 {dimension_numbers = #tpu.dot_dimension_numbers<[1], [0], [0], [1], [0, 0, 1, 1], [], []>} : vector<128x16xf32>, vector<16x32xf32>, vector<128x32xf32> -> vector<128x32xf32>
    %cst_17 = arith.constant dense<0.000000e+00> : vector<128x32xf32>
    %57 = tpu.matmul %55, %4, %cst_17 {dimension_numbers = #tpu.dot_dimension_numbers<[1], [0], [0], [1], [0, 0, 1, 1], [], []>} : vector<128x16xf32>, vector<16x32xf32>, vector<128x32xf32> -> vector<128x32xf32>
    %58 = arith.addf %56, %57 : vector<128x32xf32>
    %59 = vector.broadcast %8 : vector<1x32xf32> to vector<128x32xf32>
    %60 = arith.addf %58, %59 : vector<128x32xf32>
    %61 = vector.extract_strided_slice %13 {offsets = [0, 0], sizes = [128, 1], strides = [1, 1]} : vector<128x2xf32> to vector<128x1xf32>
    %62 = vector.extract_strided_slice %60 {offsets = [0, 0], sizes = [128, 16], strides = [1, 1]} : vector<128x32xf32> to vector<128x16xf32>
    %63 = vector.broadcast %61 : vector<128x1xf32> to vector<128x16xf32>
    %64 = arith.mulf %63, %62 : vector<128x16xf32>
    %65 = vector.extract_strided_slice %13 {offsets = [0, 1], sizes = [128, 1], strides = [1, 1]} : vector<128x2xf32> to vector<128x1xf32>
    %66 = vector.extract_strided_slice %60 {offsets = [0, 16], sizes = [128, 16], strides = [1, 1]} : vector<128x32xf32> to vector<128x16xf32>
    %67 = vector.broadcast %65 : vector<128x1xf32> to vector<128x16xf32>
    %68 = arith.mulf %67, %66 : vector<128x16xf32>
    %69 = arith.addf %64, %68 : vector<128x16xf32>
    %c0_18 = arith.constant 0 : index
    %c0_19 = arith.constant 0 : index
    %70 = vector.load %arg3[%c0_18, %c0_19] : memref<128x16xf32, #tpu.memory_space<vmem>>, vector<128x16xf32>
    tpu.vector_store %arg3[%c0_18, %c0_19], %69 {strides = array<i32>} : memref<128x16xf32, #tpu.memory_space<vmem>>, vector<128x16xf32>,
    return
  }
  func.func @transform_0(%arg0: i32) -> (i32, i32) {
    %c0_i32 = arith.constant 0 : i32
    %c0_i32_0 = arith.constant 0 : i32
    return %arg0, %c0_i32 : i32, i32
  }
  func.func @transform_1(%arg0: i32) -> (i32, i32) {
    %c0_i32 = arith.constant 0 : i32
    %c0_i32_0 = arith.constant 0 : i32
    %c0_i32_1 = arith.constant 0 : i32
    return %c0_i32, %c0_i32_0 : i32, i32
  }
  func.func @transform_2(%arg0: i32) -> (i32, i32) {
    %c0_i32 = arith.constant 0 : i32
    %c0_i32_0 = arith.constant 0 : i32
    return %arg0, %c0_i32 : i32, i32
  }
}

</mosaic_0001>

<bundles_post_ra>
// kernel: tpu_custom_call.1
= control target key start
LH: loop header
LB: loop body
LE: loop exit
PB: predicated region body
PF: predicated region fallthrough
CT: control target
= control target key end

     0   :  { %s2421_s9 = smov 0   ;;  %s3560_s0 = inlined_call_operand.vmem [shape: f32[256,20], index: 0, kind: input, shape index: {}]   ;;  %s3561_s1 = inlined_call_operand.vmem [shape: f32[72,32], index: 1, kind: input, shape index: {}]   ;;  %s3562_s2 = inlined_call_operand.vmem [shape: f32[256,16], index: 2, kind: output, shape index: {}]  }
   0x1 LB: > { %s2014_s10 = sadd.s32 4294967295, %s2398_s9   ;;  %p2018_p0 = scmp.ge.s32.totalorder %s2398_s9, 1  ;;  %s2398_s9 = sphi %s2421_s9, %s12_s9  }
   0x2   : > { %p113_p1 = scmp.lt.s32.totalorder %s2398_s9, 3 }
   0x4   : > { %p114_p2 = pnand %p2018_p0, %p113_p1 }
   0x6   : > { %117 = sbr.rel (%p114_p2) target bundleno = 1170 (0x492), region = 28 }
   0xd   : > { %v147_v0 = vld [vmem:[%s3561_s1] sm:$0xff]  ;;  %s2019_s13 = sshll.u32 %s2014_s10, 4  ;;  %v2400_v1 = vmov 17   ;;  %vm179_vm0 = vcmask 64512   ;;  %v2401_v13 = vmov 16   ;;  %v148_v19 = vld [vmem:[%s3561_s1 + $0x8] sm:$0xff] }
   0xe   : > { %2197 = vmatprep.subr.mxu0 %v147_v0  ;;  %p136_p3 = scmp.lt.s32.totalorder %s2019_s13, 31  ;;  %2377 = vset.pattern.permute.xlu0 %v2400_v1  ;;  %v149_v20 = vld [vmem:[%s3561_s1 + $0x10] sm:$0xff]  ;;  %v2565_v23 = vld [vmem:[%s3561_s1 + $0x40] ss:$0 sm:$0xff]  ;;  %s2402_s24 = smov 112   ;;  %vm633_vm1 = vcmask 130048  }
   0xf   : > { %2198 = vmatpush3.msra.mxu0 %v147_v0  ;;  %2378 = vset.pattern.permute.xlu1 %v2400_v1  ;;  %v2333_v21 = vpack.c.bf16 %v149_v20, %v148_v19  ;;  %s2403_s27 = smov 120  }
  0x10   : > { %s3755_s13 = smov (!%p136_p3, %s2019_s13), 31 }
  0x11   : > { %s2020_s14 = sshll.u32 %s3755_s13, 3  ;;  %2334 = vmatprep.subr.bf16.mxu0 %v2333_v21  ;;  %2345 = vmatprep.subr.bf16.mxu1 %v2333_v21 }
  0x12   : > { %s2442_s17 = scalar_lea.vmem %s3560_s0, %s2020_s14  ;;  %2346 = vmatpush3.bf16.msra.mxu1 %v2333_v21  ;;  %s3493_s19 = scalar_lea.vmem %s3562_s2, %s2020_s14 }
  0x13   : > { %v2445_v2 = vld [vmem:[%s2442_s17] sm:$0xff]  ;;  %v2448_v3 = vld [vmem:[%s2442_s17 + $0x8] sm:$0xff]  ;;  %v2451_v4 = vld [vmem:[%s2442_s17 + $0x10] sm:$0xff] }
  0x14   : > { %2199 = vmatprep.mubr.msk.f32.mxu0 %vm179_vm0, %v2445_v2  ;;  %470 = vperm.xlu0 %2377, %v2445_v2   ;;  %v2462_v5 = vld [vmem:[%s2442_s17 + $0x18] sm:$0xff]  ;;  %v2465_v6 = vld [vmem:[%s2442_s17 + $0x20] sm:$0xff]  ;;  %v2474_v7 = vld [vmem:[%s2442_s17 + $0x28] sm:$0xff] }
  0x15   : > { %2200 = vmatmul.mubr.msk.f32.vlgmr.msra.gmra.mrb[0].mxu0 %vm179_vm0, %v2448_v3  ;;  %478 = vperm.xlu1 %2378, %v2451_v4   ;;  %v2477_v8 = vld [vmem:[%s2442_s17 + $0x30] sm:$0xff]  ;;  %v2486_v9 = vld [vmem:[%s2442_s17 + $0x38] sm:$0xff]  ;;  %v2489_v10 = vld [vmem:[%s2442_s17 + $0x40] sm:$0xff] }
  0x16   : > { %2202 = vmatprep.mubr.msk.f32.mxu0 %vm179_vm0, %v2451_v4  ;;  %v2498_v11 = vld [vmem:[%s2442_s17 + $0x48] sm:$0xff]  ;;  %v2501_v12 = vld [vmem:[%s2442_s17 + $0x50] sm:$0xff]  ;;  %v2510_v14 = vld [vmem:[%s2442_s17 + $0x58] sm:$0xff]  ;;  %2336 = vmatpush3.bf16.msra.mxu0 %v2333_v21 }
  0x17   : > { %v2514_v15 = vld [vmem:[%s2442_s17 + $0x60] sm:$0xff]  ;;  %v2522_v16 = vld [vmem:[%s2442_s17 + $0x68] sm:$0xff]  ;;  %v2526_v17 = vld [vmem:[%s2442_s17 + $0x70] sm:$0xff] }
  0x18   : > { %474 = vperm.xlu0 %2377, %v2448_v3   ;;  %v2535_v18 = vld [vmem:[%s2442_s17 + $0x78] sm:$0xff] }
  0x19   : > { %2203 = vmatmul.mubr.msk.f32.gmra.mrb[2].mxu0 %vm179_vm0, %v2462_v5  ;;  %482 = vperm.xlu1 %2378, %v2462_v5  }
  0x1a   : > { %2205 = vmatprep.mubr.msk.f32.mxu0 %vm179_vm0, %v2465_v6 }
  0x1c   : > { %486 = vperm.xlu0 %2377, %v2465_v6  }
  0x1d   : > { %2206 = vmatmul.mubr.msk.f32.gmra.mrb[4].mxu0 %vm179_vm0, %v2474_v7  ;;  %490 = vperm.xlu1 %2378, %v2474_v7  }
  0x1e   : > { %2208 = vmatprep.mubr.msk.f32.mxu0 %vm179_vm0, %v2477_v8 }
  0x20   : > { %494 = vperm.xlu0 %2377, %v2477_v8  }
  0x21   : > { %2209 = vmatmul.mubr.msk.f32.gmra.mrb[6].mxu0 %vm179_vm0, %v2486_v9  ;;  %498 = vperm.xlu1 %2378, %v2486_v9  }
  0x22   : > { %2211 = vmatprep.mubr.msk.f32.mxu0 %vm179_vm0, %v2489_v10 }
  0x24   : > { %506 = vperm.xlu0 %2377, %v2498_v11  }
  0x25   : > { %2212 = vmatmul.mubr.msk.f32.gmra.mrb[8].mxu0 %vm179_vm0, %v2498_v11  ;;  %2379 = vset.pattern.permute.xlu1 %v2401_v13 }
  0x26   : > { %2214 = vmatprep.mubr.msk.f32.mxu0 %vm179_vm0, %v2501_v12  ;;  %394 = vperm.xlu1 %2379, %v2448_v3  }
  0x28   : > { %518 = vperm.xlu0 %2377, %v2514_v15  }
  0x29   : > { %2215 = vmatmul.mubr.msk.f32.gmra.mrb[10].mxu0 %vm179_vm0, %v2510_v14 }
  0x2a   : > { %2217 = vmatprep.mubr.msk.f32.mxu0 %vm179_vm0, %v2514_v15  ;;  %398 = vperm.xlu1 %2379, %v2451_v4  }
  0x2c   : > { %2384 = vset.pattern.permute.xlu0 %v2401_v13 }
  0x2d   : > { %2218 = vmatmul.mubr.msk.f32.gmra.mrb[12].mxu0 %vm179_vm0, %v2522_v16  ;;  %390 = vperm.xlu0 %2384, %v2445_v2  }
  0x2e   : > { %2220 = vmatprep.mubr.msk.f32.mxu0 %vm179_vm0, %v2526_v17  ;;  %2380 = vset.pattern.permute.xlu1 %v2400_v1 }
  0x2f   : > { %502 = vperm.xlu1 %2380, %v2489_v10  }
  0x31   : > { %402 = vperm.xlu0 %2384, %v2462_v5   ;;  %2221 = vmatmul.mubr.msk.f32.gmra.mrb[14].mxu0 %vm179_vm0, %v2535_v18 }
  0x33   : > { %2381 = vset.pattern.permute.xlu1 %v2401_v13 }
  0x34   : > { %406 = vperm.xlu1 %2381, %v2465_v6  }
  0x35   : > { %414 = vperm.xlu0 %2384, %v2477_v8  }
  0x38   : > { %410 = vperm.xlu1 %2381, %v2474_v7  }
  0x3c   : > { %2382 = vset.pattern.permute.xlu1 %v2400_v1 }
  0x3d   : > { %510 = vperm.xlu1 %2382, %v2501_v12  }
  0x41   : > { %514 = vperm.xlu1 %2382, %v2510_v14  }
  0x45   : > { %2383 = vset.pattern.permute.xlu1 %v2401_v13 }
  0x46   : > { %418 = vperm.xlu1 %2383, %v2486_v9  }
  0x4a   : > { %2385 = vset.pattern.permute.xlu1 %v2400_v1 }
  0x4b   : > { %522 = vperm.xlu1 %2385, %v2522_v16  }
  0x4f   : > { %526 = vperm.xlu1 %2385, %v2526_v17  }
  0x93   : > { %v2560_v22 = vpop.permute.xlu0 %470 }
  0x94   : > { %v2567_v24 = vpop.permute.xlu1 %478 }
  0x97   : > { %v2576_v30 = vpop.permute.xlu0 %474 }
  0x98   : > { %v2585_v36 = vpop.permute.xlu1 %482 }
  0x9b   : > { %v2605_v46 = vpop.permute.xlu0 %486 }
  0x9c   : > { %v2610_v48 = vpop.permute.xlu1 %490 }
  0x9f   : > { %v2635_v62 = vpop.permute.xlu0 %494 }
  0xa0   : > { %v2645_v1 = vpop.permute.xlu1 %498 }
  0xe8   : > { %v2201_v25 = vpop.f32.mrb[0].mxu0 }
  0xe9   : > { %v2570_v26 = vadd.f32 %v2201_v25, %v2565_v23  ;;  %v294_v27 = vpop.f32.mrb[1].mxu0 }
  0xea   : > { %v2573_v28 = vadd.f32 %v2565_v23, %v294_v27 }
  0xeb   : > { %v374_v29 = vmax.f32 %v2570_v26, 0.0 }
  0xec   : > { %v2204_v31 = vpop.f32.mrb[2].mxu0  ;;  %v373_v33 = vmax.f32 %v2573_v28, 0.0 }
  0xed   : > { %v534_v32 = vmul.f32 %v2576_v30, %v374_v29  ;;  %v2583_v34 = vadd.f32 %v2204_v31, %v2565_v23  ;;  %v304_v35 = vpop.f32.mrb[3].mxu0 }
  0xee   : > { %v2588_v37 = vadd.f32 %v2565_v23, %v304_v35  ;;  %v533_v40 = vmul.f32 %v2560_v22, %v373_v33 }
  0xef   : > { %v3570_v38 = vmax.f32 %v2583_v34, 0.0  ;;  %567 = vrot.lane.b32.xlu0 %v534_v32, %s2402_s24 }
  0xf0   : > { %v2207_v39 = vpop.f32.mrb[4].mxu0  ;;  %v3571_v42 = vmax.f32 %v2588_v37, 0.0 }
  0xf1   : > { %v536_v41 = vmul.f32 %v2585_v36, %v3570_v38  ;;  %v2600_v43 = vadd.f32 %v2207_v39, %v2565_v23  ;;  %v314_v44 = vpop.f32.mrb[5].mxu0 }
  0xf2   : > { %v2603_v45 = vadd.f32 %v2565_v23, %v314_v44  ;;  %v535_v51 = vmul.f32 %v2567_v24, %v3571_v42 }
  0xf3   : > { %v3565_v47 = vmax.f32 %v2600_v43, 0.0  ;;  %571 = vrot.lane.b32.xlu1 %v536_v41, %s2402_s24  ;;  %565 = vrot.lane.b32.xlu0 %v533_v40, %s2402_s24  ;;  %v2668_v40 = vld [vmem:[%s3561_s1 + $0x18] sm:$0xff] }
  0xf4   : > { %v3567_v49 = vmax.f32 %v2603_v45, 0.0  ;;  %v2210_v50 = vpop.f32.mrb[6].mxu0  ;;  %2251 = vmatprep.subr.mxu0 %v2668_v40 }
  0xf5   : > { %v538_v52 = vmul.f32 %v2610_v48, %v3565_v47  ;;  %v2620_v53 = vadd.f32 %v2210_v50, %v2565_v23  ;;  %v324_v54 = vpop.f32.mrb[7].mxu0  ;;  %v2676_v50 = vpop.permute.xlu1 %394 }
  0xf6   : > { %v2623_v55 = vadd.f32 %v2565_v23, %v324_v54  ;;  %v537_v56 = vmul.f32 %v2605_v46, %v3567_v49 }
  0xf7   : > { %569 = vrot.lane.b32.xlu1 %v535_v51, %s2402_s24  ;;  %575 = vrot.lane.b32.xlu0 %v538_v52, %s2402_s24  ;;  %v3563_v59 = vmax.f32 %v2620_v53, 0.0 }
  0xf8   : > { %v3564_v57 = vmax.f32 %v2623_v55, 0.0  ;;  %v2213_v58 = vpop.f32.mrb[8].mxu0 }
  0xf9   : > { %v2633_v60 = vadd.f32 %v2213_v58, %v2565_v23  ;;  %v334_v61 = vpop.f32.mrb[9].mxu0  ;;  %v540_v20 = vmul.f32 %v2645_v1, %v3563_v59  ;;  %v2685_v52 = vpop.permute.xlu1 %398 }
  0xfa   : > { %v2638_v63 = vadd.f32 %v2565_v23, %v334_v61  ;;  %v539_v0 = vmul.f32 %v2635_v62, %v3564_v57 }
  0xfb   : > { %530 = vperm.xlu1 %2385, %v2535_v18   ;;  %573 = vrot.lane.b32.xlu0 %v537_v56, %s2402_s24 }
  0xfc   : > { %v2216_v19 = vpop.f32.mrb[10].mxu0 }
  0xfd   : > { %v2651_v21 = vadd.f32 %v2216_v19, %v2565_v23  ;;  %v344_v25 = vpop.f32.mrb[11].mxu0  ;;  %v2689_v54 = vpop.permute.xlu1 %502  ;;  %v3568_v19 = vmax.f32 %v2633_v60, 0.0 }
  0xfe   : > { %v2654_v27 = vadd.f32 %v2565_v23, %v344_v25 }
  0xff   : > { %579 = vrot.lane.b32.xlu1 %v540_v20, %s2402_s24  ;;  %577 = vrot.lane.b32.xlu0 %v539_v0, %s2402_s24  ;;  %v3566_v0 = vmax.f32 %v2638_v63, 0.0  ;;  %v3576_v25 = vmax.f32 %v2651_v21, 0.0 }
 0x100   : > { %v2219_v31 = vpop.f32.mrb[12].mxu0  ;;  %2386 = vset.pattern.permute.xlu1 %v2401_v13 }
 0x101   : > { %v2660_v32 = vadd.f32 %v2219_v31, %v2565_v23  ;;  %v354_v35 = vpop.f32.mrb[13].mxu0  ;;  %v3569_v31 = vmax.f32 %v2654_v27, 0.0 }
 0x102   : > { %v2663_v39 = vadd.f32 %v2565_v23, %v354_v35  ;;  %v541_v35 = vmul.f32 %v2689_v54, %v3566_v0 }
 0x103   : > { %961 = vrot.lane.b32.xlu1 %v2448_v3, %s2403_s27  ;;  %959 = vrot.lane.b32.xlu0 %v2445_v2, %s2403_s27  ;;  %v3574_v57 = vmax.f32 %v2660_v32, 0.0 }
 0x104   : > { %v2222_v41 = vpop.f32.mrb[14].mxu0  ;;  %v3575_v49 = vmax.f32 %v2663_v39, 0.0 }
 0x105   : > { %v2674_v13 = vadd.f32 %v2222_v41, %v2565_v23  ;;  %v364_v44 = vpop.f32.mrb[15].mxu0  ;;  %v2724_v41 = vpop.permute.xlu0 %506 }
 0x106   : > { %v2679_v51 = vadd.f32 %v2565_v23, %v364_v44  ;;  %v2693_v23 = vpop.permute.xlu1 %406  ;;  %v542_v44 = vmul.f32 %v2724_v41, %v3568_v19 }
 0x107   : > { %965 = vrot.lane.b32.xlu1 %v2462_v5, %s2403_s27  ;;  %963 = vrot.lane.b32.xlu0 %v2451_v4, %s2403_s27 }
 0x109   : > { %v2747_v38 = vpop.permute.xlu0 %518 }
 0x10a   : > { %v2699_v56 = vpop.permute.xlu1 %410  ;;  %3642 = vst [vmem:[#allocation4_spill] sm:$0xff] %v2747_v38 }
 0x10b   : > { %969 = vrot.lane.b32.xlu1 %v2474_v7, %s2403_s27  ;;  %967 = vrot.lane.b32.xlu0 %v2465_v6, %s2403_s27 }
 0x10e   : > { %v2703_v58 = vpop.permute.xlu1 %510 }
 0x10f   : > { %973 = vrot.lane.b32.xlu1 %v2486_v9, %s2403_s27  ;;  %971 = vrot.lane.b32.xlu0 %v2477_v8, %s2403_s27  ;;  %3640 = vst [vmem:[#allocation2_spill] sm:$0xff] %v2703_v58  ;;  %v543_v47 = vmul.f32 %v2703_v58, %v3569_v31  ;;  %v3573_v31 = vmax.f32 %v2679_v51, 0.0  ;;  %v3646_v58 = vmax.f32 %v2583_v34, 0.0 }
 0x112   : > { %v2709_v61 = vpop.permute.xlu1 %514 }
 0x113   : > { %977 = vrot.lane.b32.xlu1 %v2498_v11, %s2403_s27  ;;  %975 = vrot.lane.b32.xlu0 %v2489_v10, %s2403_s27  ;;  %v544_v0 = vmul.f32 %v2709_v61, %v3576_v25 }
 0x116   : > { %v2715_v20 = vpop.permute.xlu1 %418 }
 0x117   : > { %981 = vrot.lane.b32.xlu1 %v2510_v14, %s2403_s27  ;;  %979 = vrot.lane.b32.xlu0 %v2501_v12, %s2403_s27 }
 0x11a   : > { %v2729_v59 = vpop.permute.xlu1 %522 }
 0x11b   : > { %985 = vrot.lane.b32.xlu1 %v2522_v16, %s2403_s27  ;;  %983 = vrot.lane.b32.xlu0 %v2514_v15, %s2403_s27  ;;  %3641 = vst [vmem:[#allocation3_spill] sm:$0xff] %v2729_v59  ;;  %v546_v19 = vmul.f32 %v2729_v59, %v3574_v57 }
 0x11e   : > { %v2749_v42 = vpop.permute.xlu1 %526 }
 0x11f   : > { %989 = vrot.lane.b32.xlu1 %v2535_v18, %s2403_s27  ;;  %987 = vrot.lane.b32.xlu0 %v2526_v17, %s2403_s27  ;;  %3643 = vst [vmem:[#allocation5_spill] sm:$0xff] %v2749_v42 }
 0x123   : > { %426 = vperm.xlu1 %2386, %v2498_v11   ;;  %422 = vperm.xlu0 %2384, %v2489_v10  }
 0x127   : > { %430 = vperm.xlu1 %2386, %v2501_v12   ;;  %434 = vperm.xlu0 %2384, %v2510_v14  }
 0x12b   : > { %438 = vperm.xlu1 %2386, %v2514_v15   ;;  %442 = vperm.xlu0 %2384, %v2522_v16  }
 0x12f   : > { %446 = vperm.xlu1 %2386, %v2526_v17   ;;  %450 = vperm.xlu0 %2384, %v2535_v18  }
 0x133   : > { %581 = vrot.lane.b32.xlu1 %v541_v35, %s2402_s24  ;;  %583 = vrot.lane.b32.xlu0 %v542_v44, %s2402_s24  ;;  %v545_v35 = vmul.f32 %v2747_v38, %v3575_v49  ;;  %v3645_v38 = vmax.f32 %v2588_v37, 0.0 }
 0x135   : > { %v455_v59 = vmul.f32 %v2685_v52, %v3645_v38  ;;  %v3648_v38 = vmax.f32 %v2600_v43, 0.0 }
 0x137   : > { %585 = vrot.lane.b32.xlu1 %v543_v47, %s2402_s24  ;;  %587 = vrot.lane.b32.xlu0 %v544_v0, %s2402_s24  ;;  %v547_v47 = vmul.f32 %v2749_v42, %v3573_v31  ;;  %v3572_v0 = vmov 19   ;;  %v454_v31 = vmul.f32 %v2676_v50, %v374_v29  ;;  %v458_v34 = vmul.f32 %v2699_v56, %v3648_v38 }
 0x138   : > { %2387 = vset.pattern.permute.xlu1 %v3572_v0  ;;  %2388 = vset.pattern.permute.xlu0 %v3572_v0 }
 0x13b   : > { %589 = vrot.lane.b32.xlu1 %v545_v35, %s2402_s24  ;;  %591 = vrot.lane.b32.xlu0 %v546_v19, %s2402_s24  ;;  %v2766_v19 = vpop.permute.xlu0 %390 }
 0x13c   : > { %3644 = vst [vmem:[#allocation6_spill] sm:$0xff] %v2766_v19  ;;  %v453_v0 = vmul.f32 %v2766_v19, %v373_v33 }
 0x13f   : > { %593 = vrot.lane.b32.xlu1 %v547_v47, %s2402_s24  ;;  %v2770_v44 = vpop.permute.xlu0 %402 }
 0x140   : > { %v456_v28 = vmul.f32 %v2770_v44, %v3646_v58 }
 0x143   : > { %1265 = vperm.xlu1 %2387, %v2445_v2   ;;  %v2773_v35 = vpop.permute.xlu0 %414 }
 0x147   : > { %1273 = vperm.xlu1 %2387, %v2451_v4  }
 0x14b   : > { %1277 = vperm.xlu1 %2387, %v2462_v5  }
 0x14f   : > { %1285 = vperm.xlu1 %2387, %v2474_v7  }
 0x153   : > { %1293 = vperm.xlu1 %2387, %v2486_v9  }
 0x157   : > { %1301 = vperm.xlu1 %2387, %v2498_v11  }
 0x15b   : > { %1309 = vperm.xlu1 %2387, %v2510_v14  }
 0x15f   : > { %1317 = vperm.xlu1 %2387, %v2522_v16  }
 0x161   : > { %v568_v47 = vpop.permute.xlu0 %567 }
 0x162   : > { %v614_v42 = vadd.f32 %v568_v47, %v454_v31 }
 0x163   : > { %1325 = vperm.xlu1 %2387, %v2535_v18  }
 0x165   : > { %v572_v57 = vpop.permute.xlu1 %571  ;;  %v566_v49 = vpop.permute.xlu0 %565 }
 0x166   : > { %v613_v25 = vadd.f32 %v566_v49, %v453_v0  ;;  %v616_v29 = vadd.f32 %v572_v57, %v456_v28  ;;  %v3647_v49 = vmax.f32 %v2603_v45, 0.0  ;;  %v388_v0 = vmax.f32 %v2674_v13, 0.0 }
 0x167   : > { %v3650_v28 = vmax.f32 %v2620_v53, 0.0 }
 0x168   : > { %2227 = vmatprep.mubr.msk.f32.mxu0 %vm633_vm1, %v613_v25  ;;  %v457_v37 = vmul.f32 %v2693_v23, %v3647_v49 }
 0x169   : > { %v570_v33 = vpop.permute.xlu1 %569  ;;  %v576_v19 = vpop.permute.xlu0 %575  ;;  %2228 = vmatmul.mubr.msk.f32.vlgmr.msra.gmra.mrb[16].mxu0 %vm633_vm1, %v614_v42  ;;  %v3649_v42 = vmax.f32 %v2623_v55, 0.0 }
 0x16a   : > { %v615_v26 = vadd.f32 %v570_v33, %v455_v59  ;;  %2252 = vmatpush3.msra.mxu0 %v2668_v40  ;;  %v618_v31 = vadd.f32 %v576_v19, %v458_v34  ;;  %v2405_v40 = vmov 18   ;;  %v460_v33 = vmul.f32 %v2715_v20, %v3650_v28 }
 0x16b   : > { %v459_v59 = vmul.f32 %v2773_v35, %v3649_v42  ;;  %2390 = vset.pattern.permute.xlu1 %v2405_v40 }
 0x16c   : > { %2230 = vmatprep.mubr.msk.f32.mxu0 %vm633_vm1, %v615_v26  ;;  %1189 = vperm.xlu1 %2390, %v2448_v3  }
 0x16d   : > { %v574_v25 = vpop.permute.xlu0 %573  ;;  %2231 = vmatmul.mubr.msk.f32.gmra.mrb[18].mxu0 %vm633_vm1, %v616_v29 }
 0x16e   : > { %v617_v58 = vadd.f32 %v574_v25, %v457_v37 }
 0x170   : > { %2233 = vmatprep.mubr.msk.f32.mxu0 %vm633_vm1, %v617_v58  ;;  %1193 = vperm.xlu1 %2390, %v2451_v4  }
 0x171   : > { %v578_v45 = vpop.permute.xlu0 %577  ;;  %2234 = vmatmul.mubr.msk.f32.gmra.mrb[20].mxu0 %vm633_vm1, %v618_v31 }
 0x172   : > { %v619_v57 = vadd.f32 %v578_v45, %v459_v59 }
 0x174   : > { %2236 = vmatprep.mubr.msk.f32.mxu0 %vm633_vm1, %v619_v57  ;;  %1201 = vperm.xlu1 %2390, %v2465_v6  }
 0x175   : > { %v960_v43 = vpop.permute.xlu0 %959 }
 0x178   : > { %1209 = vperm.xlu1 %2390, %v2477_v8  }
 0x179   : > { %v964_v55 = vpop.permute.xlu0 %963 }
 0x17a   : > { %v2809_v19 = vpop.permute.xlu1 %530 }
 0x17b   : > { %v548_v47 = vmul.f32 %v2809_v19, %v388_v0 }
 0x17c   : > { %1217 = vperm.xlu1 %2390, %v2489_v10  }
 0x17d   : > { %595 = vrot.lane.b32.xlu0 %v548_v47, %s2402_s24  ;;  %v968_v26 = vpop.permute.xlu0 %967 }
 0x17e   : > { %v580_v29 = vpop.permute.xlu1 %579 }
 0x17f   : > { %v620_v4 = vadd.f32 %v580_v29, %v460_v33 }
 0x180   : > { %1225 = vperm.xlu1 %2390, %v2501_v12  }
 0x181   : > { %2237 = vmatmul.mubr.msk.f32.gmra.mrb[22].mxu0 %vm633_vm1, %v620_v4  ;;  %1269 = vperm.xlu0 %2388, %v2448_v3   ;;  %v972_v37 = vpop.permute.xlu0 %971 }
 0x182   : > { %v962_v49 = vpop.permute.xlu1 %961  ;;  %2253 = vmatprep.mubr.msk.f32.mxu0 %vm179_vm0, %v960_v43 }
 0x184   : > { %1233 = vperm.xlu1 %2390, %v2514_v15  }
 0x185   : > { %2254 = vmatmul.mubr.msk.f32.vlgmr.msra.gmra.mrb[24].mxu0 %vm179_vm0, %v962_v49  ;;  %1281 = vperm.xlu0 %2388, %v2465_v6   ;;  %v976_v38 = vpop.permute.xlu0 %975 }
 0x186   : > { %v966_v53 = vpop.permute.xlu1 %965  ;;  %2256 = vmatprep.mubr.msk.f32.mxu0 %vm179_vm0, %v964_v55  ;;  %v3658_v55 = vmax.f32 %v2638_v63, 0.0 }
 0x188   : > { %1241 = vperm.xlu1 %2390, %v2526_v17  }
 0x189   : > { %2257 = vmatmul.mubr.msk.f32.gmra.mrb[26].mxu0 %vm179_vm0, %v966_v53  ;;  %1289 = vperm.xlu0 %2388, %v2477_v8   ;;  %v980_v34 = vpop.permute.xlu0 %979  ;;  %v3662_v53 = vmax.f32 %v2660_v32, 0.0  ;;  %v3664_v32 = vmov 19  }
 0x18a   : > { %v970_v3 = vpop.permute.xlu1 %969  ;;  %2259 = vmatprep.mubr.msk.f32.mxu0 %vm179_vm0, %v968_v26  ;;  %v3659_v26 = vmax.f32 %v2654_v27, 0.0 }
 0x18d   : > { %2260 = vmatmul.mubr.msk.f32.gmra.mrb[28].mxu0 %vm179_vm0, %v970_v3  ;;  %1297 = vperm.xlu0 %2388, %v2489_v10   ;;  %v984_v25 = vpop.permute.xlu0 %983 }
 0x18e   : > { %v974_v6 = vpop.permute.xlu1 %973  ;;  %2262 = vmatprep.mubr.msk.f32.mxu0 %vm179_vm0, %v972_v37  ;;  %v3661_v37 = vmax.f32 %v2663_v39, 0.0 }
 0x191   : > { %2263 = vmatmul.mubr.msk.f32.gmra.mrb[30].mxu0 %vm179_vm0, %v974_v6  ;;  %1305 = vperm.xlu0 %2388, %v2501_v12   ;;  %v988_v31 = vpop.permute.xlu0 %987 }
 0x192   : > { %v978_v8 = vpop.permute.xlu1 %977  ;;  %2265 = vmatprep.mubr.msk.f32.mxu0 %vm179_vm0, %v976_v38 }
 0x195   : > { %2266 = vmatmul.mubr.msk.f32.gmra.mrb[32].mxu0 %vm179_vm0, %v978_v8  ;;  %1313 = vperm.xlu0 %2388, %v2514_v15  }
 0x196   : > { %v982_v58 = vpop.permute.xlu1 %981  ;;  %2268 = vmatprep.mubr.msk.f32.mxu0 %vm179_vm0, %v980_v34  ;;  %v3663_v34 = vmax.f32 %v2679_v51, 0.0 }
 0x199   : > { %2269 = vmatmul.mubr.msk.f32.gmra.mrb[34].mxu0 %vm179_vm0, %v982_v58  ;;  %1321 = vperm.xlu0 %2388, %v2526_v17  }
 0x19a   : > { %v986_v10 = vpop.permute.xlu1 %985  ;;  %2271 = vmatprep.mubr.msk.f32.mxu0 %vm179_vm0, %v984_v25 }
 0x19d   : > { %2272 = vmatmul.mubr.msk.f32.gmra.mrb[36].mxu0 %vm179_vm0, %v986_v10  ;;  %2389 = vset.pattern.permute.xlu0 %v2405_v40 }
 0x19e   : > { %v990_v12 = vpop.permute.xlu1 %989  ;;  %2274 = vmatprep.mubr.msk.f32.mxu0 %vm179_vm0, %v988_v31  ;;  %1185 = vperm.xlu0 %2389, %v2445_v2  }
 0x1a1   : > { %2275 = vmatmul.mubr.msk.f32.gmra.mrb[38].mxu0 %vm179_vm0, %v990_v12 }
 0x1a2   : > { %v2849_v15 = vpop.permute.xlu1 %426  ;;  %v2851_v42 = vpop.permute.xlu0 %422  ;;  %1197 = vperm.xlu0 %2389, %v2462_v5   ;;  %v3657_v5 = vmax.f32 %v2633_v60, 0.0 }
 0x1a4   : > { %v462_v43 = vmul.f32 %v2849_v15, %v3657_v5 }
 0x1a6   : > { %v2854_v17 = vpop.permute.xlu1 %430  ;;  %v2856_v59 = vpop.permute.xlu0 %434  ;;  %1205 = vperm.xlu0 %2389, %v2474_v7   ;;  %v461_v7 = vmul.f32 %v2851_v42, %v3658_v55 }
 0x1a7   : > { %3651 = vst [vmem:[#allocation7_spill] sm:$0xff] %v2854_v17  ;;  %3652 = vst [vmem:[#allocation8_spill] sm:$0xff] %v2856_v59  ;;  %v463_v29 = vmul.f32 %v2854_v17, %v3659_v26 }
 0x1aa   : > { %v2859_v45 = vpop.permute.xlu1 %438  ;;  %v2861_v57 = vpop.permute.xlu0 %442  ;;  %1213 = vperm.xlu0 %2389, %v2486_v9  }
 0x1ab   : > { %3653 = vst [vmem:[#allocation9_spill] sm:$0xff] %v2859_v45  ;;  %3654 = vst [vmem:[#allocation10_spill] sm:$0xff] %v2861_v57  ;;  %v465_v27 = vmul.f32 %v2859_v45, %v3661_v37  ;;  %v3692_v45 = vld [vmem:[#allocation5_spill] sm:$0xff] }
 0x1ae   : > { %v2864_v2 = vpop.permute.xlu1 %446  ;;  %v2866_v40 = vpop.permute.xlu0 %450  ;;  %1221 = vperm.xlu0 %2389, %v2498_v11   ;;  %v3660_v11 = vmax.f32 %v2651_v21, 0.0  ;;  %v466_v21 = vmul.f32 %v2861_v57, %v3662_v53 }
 0x1af   : > { %3655 = vst [vmem:[#allocation11_spill] sm:$0xff] %v2864_v2  ;;  %3656 = vst [vmem:[#allocation12_spill] sm:$0xff] %v2866_v40  ;;  %v467_v39 = vmul.f32 %v2864_v2, %v3663_v34 }
 0x1b0   : > { %v464_v60 = vmul.f32 %v2856_v59, %v3660_v11  ;;  %v2938_v11 = vld [vmem:[%s3561_s1 + $0x42] ss:$0 sm:$0xff] }
 0x1b2   : > { %v582_v47 = vpop.permute.xlu1 %581  ;;  %v584_v28 = vpop.permute.xlu0 %583  ;;  %1229 = vperm.xlu0 %2389, %v2510_v14  }
 0x1b3   : > { %v621_v33 = vadd.f32 %v582_v47, %v461_v7  ;;  %v622_v9 = vadd.f32 %v584_v28, %v462_v43  ;;  %v154_v47 = vld [vmem:[%s3561_s1 + $0x38] sm:$0xff] }
 0x1b5   : > { %2239 = vmatprep.mubr.msk.f32.mxu1 %vm633_vm1, %v621_v33 }
 0x1b6   : > { %v586_v4 = vpop.permute.xlu1 %585  ;;  %2240 = vmatmul.mubr.msk.f32.vlgmr.msra.gmra.mrb[0].mxu1 %vm633_vm1, %v622_v9  ;;  %v588_v63 = vpop.permute.xlu0 %587  ;;  %1237 = vperm.xlu0 %2389, %v2522_v16  }
 0x1b7   : > { %v623_v49 = vadd.f32 %v586_v4, %v463_v29  ;;  %v624_v14 = vadd.f32 %v588_v63, %v464_v60 }
 0x1b9   : > { %2242 = vmatprep.mubr.msk.f32.mxu1 %vm633_vm1, %v623_v49 }
 0x1ba   : > { %v590_v38 = vpop.permute.xlu1 %589  ;;  %2243 = vmatmul.mubr.msk.f32.gmra.mrb[2].mxu1 %vm633_vm1, %v624_v14  ;;  %v592_v3 = vpop.permute.xlu0 %591  ;;  %1245 = vperm.xlu0 %2389, %v2535_v18   ;;  %v468_v18 = vmul.f32 %v2866_v40, %v388_v0  ;;  %v153_v0 = vld [vmem:[%s3561_s1 + $0x30] sm:$0xff] }
 0x1bb   : > { %v625_v6 = vadd.f32 %v590_v38, %v465_v27  ;;  %v626_v16 = vadd.f32 %v592_v3, %v466_v21  ;;  %v2337_v28 = vpack.c.bf16 %v154_v47, %v153_v0 }
 0x1bd   : > { %2245 = vmatprep.mubr.msk.f32.mxu1 %vm633_vm1, %v625_v6  ;;  %2338 = vmatprep.subr.bf16.mxu1 %v2337_v28 }
 0x1be   : > { %v594_v8 = vpop.permute.xlu1 %593  ;;  %2246 = vmatmul.mubr.msk.f32.gmra.mrb[4].mxu1 %vm633_vm1, %v626_v16  ;;  %2391 = vset.pattern.permute.xlu0 %v3664_v32 }
 0x1bf   : > { %v627_v25 = vadd.f32 %v594_v8, %v467_v39  ;;  %2340 = vmatpush3.bf16.msra.mxu1 %v2337_v28 }
 0x1c1   : > { %2248 = vmatprep.mubr.msk.f32.mxu1 %vm633_vm1, %v627_v25 }
 0x1c2   : > { %v2917_v7 = vpop.permute.xlu1 %1265 }
 0x1c3   : > { %3665 = vst [vmem:[#allocation13_spill] sm:$0xff] %v2917_v7 }
 0x1c6   : > { %v2919_v13 = vpop.permute.xlu1 %1273 }
 0x1c7   : > { %3666 = vst [vmem:[#allocation14_spill] sm:$0xff] %v2919_v13 }
 0x1ca   : > { %v2927_v33 = vpop.permute.xlu1 %1277 }
 0x1cb   : > { %3667 = vst [vmem:[#allocation15_spill] sm:$0xff] %v2927_v33 }
 0x1ce   : > { %v2940_v4 = vpop.permute.xlu1 %1285 }
 0x1cf   : > { %3669 = vst [vmem:[#allocation17_spill] sm:$0xff] %v2940_v4 }
 0x1d2   : > { %v2964_v39 = vpop.permute.xlu1 %1293 }
 0x1d3   : > { %3671 = vst [vmem:[#allocation19_spill] sm:$0xff] %v2964_v39 }
 0x1ef   : > { %v596_v58 = vpop.permute.xlu0 %595 }
 0x1f0   : > { %v628_v10 = vadd.f32 %v596_v58, %v468_v18 }
 0x1f2   : > { %2249 = vmatmul.mubr.msk.f32.gmra.mrb[6].mxu1 %vm633_vm1, %v628_v10 }
 0x200   : > { %v2933_v29 = vpop.permute.xlu0 %1269 }
 0x201   : > { %3668 = vst [vmem:[#allocation16_spill] sm:$0xff] %v2933_v29 }
 0x204   : > { %v2945_v14 = vpop.permute.xlu0 %1281 }
 0x205   : > { %3670 = vst [vmem:[#allocation18_spill] sm:$0xff] %v2945_v14 }
 0x208   : > { %v2968_v32 = vpop.permute.xlu0 %1289 }
 0x209   : > { %3672 = vst [vmem:[#allocation20_spill] sm:$0xff] %v2968_v32 }
 0x23c   : > { %v2905_v51 = vpop.f32.mrb[16].mxu0 }
 0x23d   : > { %v2907_v31 = vpop.f32.mrb[17].mxu0 }
 0x240   : > { %v2909_v12 = vpop.f32.mrb[18].mxu0 }
 0x241   : > { %v2911_v5 = vpop.f32.mrb[19].mxu0 }
 0x244   : > { %v2913_v43 = vpop.f32.mrb[20].mxu0 }
 0x245   : > { %v2915_v55 = vpop.f32.mrb[21].mxu0 }
 0x254   : > { %v2929_v9 = vpop.f32.mrb[22].mxu0 }
 0x255   : > { %v2931_v26 = vpop.f32.mrb[23].mxu0 }
 0x258   : > { %v2255_v60 = vpop.f32.mrb[24].mxu0 }
 0x259   : > { %v2943_v63 = vadd.f32 %v2255_v60, %v2938_v11  ;;  %v1089_v49 = vpop.f32.mrb[25].mxu0 }
 0x25a   : > { %v2948_v37 = vadd.f32 %v2938_v11, %v1089_v49 }
 0x25b   : > { %v3585_v27 = vmax.f32 %v2943_v63, 0.0 }
 0x25c   : > { %v3587_v53 = vmax.f32 %v2948_v37, 0.0  ;;  %v2258_v21 = vpop.f32.mrb[26].mxu0 }
 0x25d   : > { %v1329_v38 = vmul.f32 %v2933_v29, %v3585_v27  ;;  %v2956_v3 = vadd.f32 %v2258_v21, %v2938_v11  ;;  %v1099_v6 = vpop.f32.mrb[27].mxu0 }
 0x25e   : > { %v1328_v16 = vmul.f32 %v2917_v7, %v3587_v53  ;;  %v2962_v34 = vadd.f32 %v2938_v11, %v1099_v6 }
 0x25f   : > { %v3582_v8 = vmax.f32 %v2956_v3, 0.0  ;;  %1362 = vrot.lane.b32.xlu0 %v1329_v38, %s2402_s24  ;;  %v2988_v38 = vpop.permute.xlu1 %1301 }
 0x260   : > { %v3583_v25 = vmax.f32 %v2962_v34, 0.0  ;;  %v2261_v18 = vpop.f32.mrb[28].mxu0  ;;  %1360 = vrot.lane.b32.xlu1 %v1328_v16, %s2402_s24  ;;  %3673 = vst [vmem:[#allocation21_spill] sm:$0xff] %v2988_v38 }
 0x261   : > { %v1331_v58 = vmul.f32 %v2927_v33, %v3582_v8  ;;  %v2976_v10 = vadd.f32 %v2261_v18, %v2938_v11  ;;  %v1109_v0 = vpop.f32.mrb[29].mxu0 }
 0x262   : > { %v1330_v47 = vmul.f32 %v2919_v13, %v3583_v25  ;;  %v2982_v28 = vadd.f32 %v2938_v11, %v1109_v0  ;;  %v2996_v0 = vpop.permute.xlu0 %1297 }
 0x263   : > { %v3584_v60 = vmax.f32 %v2976_v10, 0.0  ;;  %1366 = vrot.lane.b32.xlu0 %v1331_v58, %s2402_s24  ;;  %3674 = vst [vmem:[#allocation22_spill] sm:$0xff] %v2996_v0 }
 0x264   : > { %v3586_v49 = vmax.f32 %v2982_v28, 0.0  ;;  %v2264_v21 = vpop.f32.mrb[30].mxu0  ;;  %1364 = vrot.lane.b32.xlu1 %v1330_v47, %s2402_s24 }
 0x265   : > { %v1333_v6 = vmul.f32 %v2940_v4, %v3584_v60  ;;  %v2994_v16 = vadd.f32 %v2264_v21, %v2938_v11  ;;  %v1119_v18 = vpop.f32.mrb[31].mxu0 }
 0x266   : > { %v1332_v58 = vmul.f32 %v2945_v14, %v3586_v49  ;;  %v3002_v8 = vadd.f32 %v2938_v11, %v1119_v18 }
 0x267   : > { %v3589_v47 = vmax.f32 %v2994_v16, 0.0  ;;  %1370 = vrot.lane.b32.xlu0 %v1333_v6, %s2402_s24  ;;  %v3020_v6 = vpop.permute.xlu1 %1309 }
 0x268   : > { %v3590_v25 = vmax.f32 %v3002_v8, 0.0  ;;  %v2267_v60 = vpop.f32.mrb[32].mxu0  ;;  %1368 = vrot.lane.b32.xlu1 %v1332_v58, %s2402_s24  ;;  %3675 = vst [vmem:[#allocation23_spill] sm:$0xff] %v3020_v6  ;;  %v3024_v58 = vpop.permute.xlu0 %1305 }
 0x269   : > { %v1335_v21 = vmul.f32 %v2964_v39, %v3589_v47  ;;  %v3012_v27 = vadd.f32 %v2267_v60, %v2938_v11  ;;  %v1129_v49 = vpop.f32.mrb[33].mxu0  ;;  %3676 = vst [vmem:[#allocation24_spill] sm:$0xff] %v3024_v58 }
 0x26a   : > { %v1334_v18 = vmul.f32 %v2968_v32, %v3590_v25  ;;  %v3018_v53 = vadd.f32 %v2938_v11, %v1129_v49 }
 0x26b   : > { %v3594_v14 = vmax.f32 %v3012_v27, 0.0  ;;  %1374 = vrot.lane.b32.xlu0 %v1335_v21, %s2402_s24 }
 0x26c   : > { %v3596_v47 = vmax.f32 %v3018_v53, 0.0  ;;  %v2270_v60 = vpop.f32.mrb[34].mxu0  ;;  %1372 = vrot.lane.b32.xlu1 %v1334_v18, %s2402_s24  ;;  %v151_v18 = vld [vmem:[%s3561_s1 + $0x20] sm:$0xff]  ;;  %v3060_v33 = vpop.permute.xlu0 %1313 }
 0x26d   : > { %v1337_v25 = vmul.f32 %v2988_v38, %v3594_v14  ;;  %v3032_v49 = vadd.f32 %v2270_v60, %v2938_v11  ;;  %v1139_v32 = vpop.f32.mrb[35].mxu0  ;;  %v152_v60 = vld [vmem:[%s3561_s1 + $0x28] sm:$0xff]  ;;  %3678 = vst [vmem:[#allocation26_spill] sm:$0xff] %v3060_v33  ;;  %v3065_v14 = vld [vmem:[%s3561_s1 + $0x41] ss:$0 sm:$0xff] }
 0x26e   : > { %v1336_v39 = vmul.f32 %v2996_v0, %v3596_v47  ;;  %v3038_v21 = vadd.f32 %v2938_v11, %v1139_v32  ;;  %v3050_v47 = vpop.permute.xlu1 %1317  ;;  %v3052_v32 = vpack.c.bf16 %v152_v60, %v151_v18  ;;  %v3080_v7 = vadd.f32 %v2905_v51, %v3065_v14 }
 0x26f   : > { %v3600_v4 = vmax.f32 %v3032_v49, 0.0  ;;  %1378 = vrot.lane.b32.xlu0 %v1337_v25, %s2402_s24  ;;  %3677 = vst [vmem:[#allocation25_spill] sm:$0xff] %v3050_v47 }
 0x270   : > { %v2273_v38 = vpop.f32.mrb[36].mxu0  ;;  %1376 = vrot.lane.b32.xlu1 %v1336_v39, %s2402_s24  ;;  %v3679_v39 = vmax.f32 %v3038_v21, 0.0  ;;  %2342 = vmatprep.subr.bf16.mxu1 %v3052_v32 }
 0x271   : > { %v1339_v25 = vmul.f32 %v3020_v6, %v3600_v4  ;;  %v3058_v0 = vadd.f32 %v2273_v38, %v2938_v11  ;;  %v1149_v13 = vpop.f32.mrb[37].mxu0 }
 0x272   : > { %v1338_v18 = vmul.f32 %v3024_v58, %v3679_v39  ;;  %v3071_v60 = vadd.f32 %v2938_v11, %v1149_v13  ;;  %v3098_v51 = vpop.permute.xlu1 %1325 }
 0x273   : > { %v3606_v38 = vmax.f32 %v3058_v0, 0.0  ;;  %1382 = vrot.lane.b32.xlu0 %v1339_v25, %s2402_s24  ;;  %v3090_v25 = vadd.f32 %v3065_v14, %v2907_v31  ;;  %3680 = vst [vmem:[#allocation27_spill] sm:$0xff] %v3098_v51  ;;  %v3623_v31 = vmax.f32 %v3080_v7, 0.0 }
 0x274   : > { %v3607_v4 = vmax.f32 %v3071_v60, 0.0  ;;  %v2276_v6 = vpop.f32.mrb[38].mxu0  ;;  %1380 = vrot.lane.b32.xlu1 %v1338_v18, %s2402_s24 }
 0x275   : > { %v1341_v13 = vmul.f32 %v3050_v47, %v3606_v38  ;;  %v3086_v39 = vadd.f32 %v2276_v6, %v2938_v11  ;;  %v1159_v58 = vpop.f32.mrb[39].mxu0  ;;  %v3102_v6 = vpop.permute.xlu0 %1321 }
 0x276   : > { %v1340_v18 = vmul.f32 %v3060_v33, %v3607_v4  ;;  %v3096_v29 = vadd.f32 %v2938_v11, %v1159_v58  ;;  %3681 = vst [vmem:[#allocation28_spill] sm:$0xff] %v3102_v6  ;;  %v3109_v4 = vadd.f32 %v2909_v12, %v3065_v14  ;;  %v860_v12 = vmul.f32 %v3623_v31, %v2576_v30 }
 0x277   : > { %v3608_v40 = vmax.f32 %v3086_v39, 0.0  ;;  %1386 = vrot.lane.b32.xlu0 %v1341_v13, %s2402_s24  ;;  %v3117_v13 = vadd.f32 %v3065_v14, %v2911_v5  ;;  %v3130_v58 = vadd.f32 %v2913_v43, %v3065_v14  ;;  %v3682_v5 = vmax.f32 %v3090_v25, 0.0 }
 0x278   : > { %v3610_v38 = vmax.f32 %v3096_v29, 0.0  ;;  %1384 = vrot.lane.b32.xlu1 %v1340_v18, %s2402_s24 }
 0x279   : > { %v1343_v11 = vmul.f32 %v3098_v51, %v3608_v40  ;;  %v3619_v40 = vmax.f32 %v3109_v4, 0.0  ;;  %v859_v51 = vmul.f32 %v3682_v5, %v2560_v22  ;;  %v3613_v43 = vmax.f32 %v3130_v58, 0.0 }
 0x27a   : > { %v1342_v18 = vmul.f32 %v3102_v6, %v3610_v38  ;;  %v3622_v38 = vmax.f32 %v3117_v13, 0.0 }
 0x27b   : > { %1390 = vrot.lane.b32.xlu0 %v1343_v11, %s2402_s24  ;;  %v3138_v11 = vadd.f32 %v3065_v14, %v2915_v55  ;;  %v862_v30 = vmul.f32 %v3619_v40, %v2585_v36  ;;  %v864_v36 = vmul.f32 %v3613_v43, %v2610_v48 }
 0x27c   : > { %1388 = vrot.lane.b32.xlu1 %v1342_v18, %s2402_s24  ;;  %v3148_v18 = vadd.f32 %v2929_v9, %v3065_v14  ;;  %v861_v22 = vmul.f32 %v3622_v38, %v2567_v24 }
 0x27d   : > { %v3617_v55 = vmax.f32 %v3138_v11, 0.0 }
 0x27e   : > { %v3611_v9 = vmax.f32 %v3148_v18, 0.0 }
 0x27f   : > { %893 = vrot.lane.b32.xlu0 %v860_v12, %s2402_s24  ;;  %v3156_v12 = vadd.f32 %v3065_v14, %v2931_v26  ;;  %v863_v24 = vmul.f32 %v3617_v55, %v2605_v46 }
 0x280   : > { %891 = vrot.lane.b32.xlu1 %v859_v51, %s2402_s24  ;;  %v866_v26 = vmul.f32 %v3611_v9, %v2645_v1 }
 0x281   : > { %v3612_v51 = vmax.f32 %v3156_v12, 0.0 }
 0x283   : > { %897 = vrot.lane.b32.xlu0 %v862_v30, %s2402_s24  ;;  %v865_v48 = vmul.f32 %v3612_v51, %v2635_v62 }
 0x284   : > { %895 = vrot.lane.b32.xlu1 %v861_v22, %s2402_s24 }
 0x287   : > { %901 = vrot.lane.b32.xlu0 %v864_v36, %s2402_s24 }
 0x288   : > { %899 = vrot.lane.b32.xlu1 %v863_v24, %s2402_s24 }
 0x289   : > { %v2241_v5 = vpop.f32.mrb[0].mxu1 }
 0x28a   : > { %v3177_v30 = vadd.f32 %v2241_v5, %v3065_v14  ;;  %v788_v22 = vpop.f32.mrb[1].mxu1 }
 0x28b   : > { %v3180_v46 = vadd.f32 %v3065_v14, %v788_v22  ;;  %905 = vrot.lane.b32.xlu0 %v866_v26, %s2402_s24 }
 0x28c   : > { %v3614_v36 = vmax.f32 %v3177_v30, 0.0  ;;  %903 = vrot.lane.b32.xlu1 %v865_v48, %s2402_s24 }
 0x28d   : > { %v3615_v1 = vmax.f32 %v3180_v46, 0.0  ;;  %v2244_v24 = vpop.f32.mrb[2].mxu1 }
 0x28e   : > { %v868_v62 = vmul.f32 %v3614_v36, %v2724_v41  ;;  %v3190_v5 = vadd.f32 %v2244_v24, %v3065_v14  ;;  %v798_v9 = vpop.f32.mrb[3].mxu1  ;;  %v3686_v36 = vld [vmem:[#allocation2_spill] sm:$0xff] }
 0x28f   : > { %v867_v22 = vmul.f32 %v3615_v1, %v2689_v54  ;;  %v3196_v26 = vadd.f32 %v3065_v14, %v798_v9 }
 0x290   : > { %3683 = vst [vmem:[#allocation29_spill] sm:$0xff] %v3190_v5  ;;  %v3616_v48 = vmax.f32 %v3190_v5, 0.0  ;;  %909 = vrot.lane.b32.xlu0 %v868_v62, %s2402_s24 }
 0x291   : > { %3684 = vst [vmem:[#allocation30_spill] sm:$0xff] %v3196_v26  ;;  %v3618_v51 = vmax.f32 %v3196_v26, 0.0  ;;  %v2247_v43 = vpop.f32.mrb[4].mxu1  ;;  %907 = vrot.lane.b32.xlu1 %v867_v22, %s2402_s24 }
 0x292   : > { %v870_v41 = vmul.f32 %v3616_v48, %v2709_v61  ;;  %v3206_v24 = vadd.f32 %v2247_v43, %v3065_v14  ;;  %v808_v54 = vpop.f32.mrb[5].mxu1  ;;  %v3688_v61 = vld [vmem:[#allocation3_spill] sm:$0xff]  ;;  %v3689_v48 = vld [vmem:[#allocation4_spill] sm:$0xff] }
 0x293   : > { %v869_v9 = vmul.f32 %v3618_v51, %v3686_v36  ;;  %v3212_v1 = vadd.f32 %v3065_v14, %v808_v54  ;;  %v3226_v36 = vpop.permute.xlu0 %1185  ;;  %v3228_v54 = vpop.permute.xlu1 %1189 }
 0x294   : > { %3685 = vst [vmem:[#allocation31_spill] sm:$0xff] %v3206_v24  ;;  %v3620_v62 = vmax.f32 %v3206_v24, 0.0  ;;  %913 = vrot.lane.b32.xlu0 %v870_v41, %s2402_s24 }
 0x295   : > { %3687 = vst [vmem:[#allocation2_spill] sm:$0xff] %v3212_v1  ;;  %v3621_v22 = vmax.f32 %v3212_v1, 0.0  ;;  %911 = vrot.lane.b32.xlu1 %v869_v9, %s2402_s24 }
 0x296   : > { %v872_v43 = vmul.f32 %v3620_v62, %v3688_v61 }
 0x297   : > { %v871_v55 = vmul.f32 %v3621_v22, %v3689_v48  ;;  %v3230_v41 = vpop.permute.xlu0 %1197  ;;  %v3232_v51 = vpop.permute.xlu1 %1193 }
 0x298   : > { %917 = vrot.lane.b32.xlu0 %v872_v43, %s2402_s24 }
 0x299   : > { %915 = vrot.lane.b32.xlu1 %v871_v55, %s2402_s24 }
 0x29b   : > { %v3234_v9 = vpop.permute.xlu0 %1205  ;;  %v3236_v40 = vpop.permute.xlu1 %1201 }
 0x29f   : > { %v3238_v61 = vpop.permute.xlu0 %1213  ;;  %v3240_v62 = vpop.permute.xlu1 %1209 }
 0x2a3   : > { %v3242_v48 = vpop.permute.xlu0 %1221  ;;  %v3244_v43 = vpop.permute.xlu1 %1217 }
 0x2a7   : > { %v3246_v55 = vpop.permute.xlu0 %1229  ;;  %v3248_v22 = vpop.permute.xlu1 %1225 }
 0x2ab   : > { %v3253_v33 = vpop.permute.xlu0 %1237  ;;  %v3258_v2 = vpop.permute.xlu1 %1233 }
 0x2af   : > { %v3269_v5 = vpop.permute.xlu0 %1245 }
 0x2c5   : > { %v2250_v38 = vpop.f32.mrb[6].mxu1 }
 0x2c6   : > { %v3251_v31 = vadd.f32 %v2250_v38, %v3065_v14  ;;  %v818_v6 = vpop.f32.mrb[7].mxu1 }
 0x2c7   : > { %v3256_v47 = vadd.f32 %v3065_v14, %v818_v6  ;;  %v3272_v14 = vpop.permute.xlu1 %1241  ;;  %v3693_v6 = vmax.f32 %v2948_v37, 0.0 }
 0x2c8   : > { %3690 = vst [vmem:[#allocation3_spill] sm:$0xff] %v3251_v31  ;;  %v3636_v24 = vmax.f32 %v3251_v31, 0.0  ;;  %v3694_v31 = vmax.f32 %v2943_v63, 0.0 }
 0x2c9   : > { %3691 = vst [vmem:[#allocation4_spill] sm:$0xff] %v3256_v47  ;;  %v3638_v57 = vmax.f32 %v3256_v47, 0.0  ;;  %v1248_v59 = vmul.f32 %v3226_v36, %v3693_v6 }
 0x2ca   : > { %v874_v1 = vmul.f32 %v3636_v24, %v2809_v19  ;;  %v1249_v19 = vmul.f32 %v3228_v54, %v3694_v31 }
 0x2cb   : > { %v873_v38 = vmul.f32 %v3638_v57, %v3692_v45 }
 0x2cc   : > { %921 = vrot.lane.b32.xlu0 %v874_v1, %s2402_s24  ;;  %v3695_v1 = vmax.f32 %v2962_v34, 0.0 }
 0x2cd   : > { %919 = vrot.lane.b32.xlu1 %v873_v38, %s2402_s24  ;;  %v3696_v38 = vmax.f32 %v2956_v3, 0.0 }
 0x2ce   : > { %v1250_v57 = vmul.f32 %v3232_v51, %v3695_v1 }
 0x2cf   : > { %v1251_v37 = vmul.f32 %v3230_v41, %v3696_v38 }
 0x2d1   : > { %v1363_v26 = vpop.permute.xlu0 %1362 }
 0x2d2   : > { %v1361_v24 = vpop.permute.xlu1 %1360  ;;  %v1409_v45 = vadd.f32 %v1363_v26, %v1249_v19 }
 0x2d3   : > { %v1408_v47 = vadd.f32 %v1361_v24, %v1248_v59  ;;  %v3697_v59 = vmax.f32 %v2982_v28, 0.0  ;;  %v3700_v28 = vmax.f32 %v2994_v16, 0.0 }
 0x2d5   : > { %v1367_v17 = vpop.permute.xlu0 %1366  ;;  %2281 = vmatprep.mubr.msk.f32.mxu1 %vm633_vm1, %v1408_v47  ;;  %v1252_v34 = vmul.f32 %v3236_v40, %v3697_v59  ;;  %v3698_v47 = vmax.f32 %v2976_v10, 0.0  ;;  %v1255_v1 = vmul.f32 %v3238_v61, %v3700_v28 }
 0x2d6   : > { %v1365_v6 = vpop.permute.xlu1 %1364  ;;  %2282 = vmatmul.mubr.msk.f32.vlgmr.msra.gmra.mrb[8].mxu1 %vm633_vm1, %v1409_v45  ;;  %v1411_v31 = vadd.f32 %v1367_v17, %v1251_v37 }
 0x2d7   : > { %v1410_v63 = vadd.f32 %v1365_v6, %v1250_v57  ;;  %2344 = vmatpush3.bf16.msra.mxu1 %v3052_v32  ;;  %v1253_v3 = vmul.f32 %v3234_v9, %v3698_v47  ;;  %v3699_v57 = vmax.f32 %v3002_v8, 0.0  ;;  %v3701_v6 = vmax.f32 %v3018_v53, 0.0 }
 0x2d8   : > { %v3702_v8 = vmax.f32 %v3012_v27, 0.0  ;;  %v3703_v47 = vmax.f32 %v3038_v21, 0.0  ;;  %v3704_v53 = vmax.f32 %v3032_v49, 0.0  ;;  %v3706_v21 = vmax.f32 %v3058_v0, 0.0 }
 0x2d9   : > { %v1371_v26 = vpop.permute.xlu0 %1370  ;;  %2284 = vmatprep.mubr.msk.f32.mxu1 %vm633_vm1, %v1410_v63  ;;  %v1254_v17 = vmul.f32 %v3240_v62, %v3699_v57  ;;  %v1256_v63 = vmul.f32 %v3244_v43, %v3701_v6 }
 0x2da   : > { %v1369_v24 = vpop.permute.xlu1 %1368  ;;  %2285 = vmatmul.mubr.msk.f32.gmra.mrb[10].mxu1 %vm633_vm1, %v1411_v31  ;;  %v1413_v45 = vadd.f32 %v1371_v26, %v1253_v3  ;;  %v1257_v59 = vmul.f32 %v3242_v48, %v3702_v8  ;;  %v1258_v3 = vmul.f32 %v3248_v22, %v3703_v47  ;;  %v3711_v47 = vmax.f32 %v3080_v7, 0.0 }
 0x2db   : > { %v1412_v19 = vadd.f32 %v1369_v24, %v1252_v34 }
 0x2dd   : > { %v1375_v32 = vpop.permute.xlu0 %1374  ;;  %2287 = vmatprep.mubr.msk.f32.mxu1 %vm633_vm1, %v1412_v19  ;;  %v1259_v19 = vmul.f32 %v3246_v55, %v3704_v53 }
 0x2de   : > { %v1373_v38 = vpop.permute.xlu1 %1372  ;;  %2288 = vmatmul.mubr.msk.f32.gmra.mrb[12].mxu1 %vm633_vm1, %v1413_v45  ;;  %v1415_v37 = vadd.f32 %v1375_v32, %v1255_v1  ;;  %v1261_v1 = vmul.f32 %v3253_v33, %v3706_v21 }
 0x2df   : > { %v1414_v10 = vadd.f32 %v1373_v38, %v1254_v17  ;;  %v3705_v17 = vmax.f32 %v3071_v60, 0.0  ;;  %v3708_v60 = vmax.f32 %v3086_v39, 0.0 }
 0x2e1   : > { %v1379_v31 = vpop.permute.xlu0 %1378  ;;  %2290 = vmatprep.mubr.msk.f32.mxu1 %vm633_vm1, %v1414_v10  ;;  %v1260_v32 = vmul.f32 %v3258_v2, %v3705_v17 }
 0x2e2   : > { %v1377_v34 = vpop.permute.xlu1 %1376  ;;  %2291 = vmatmul.mubr.msk.f32.gmra.mrb[14].mxu1 %vm633_vm1, %v1415_v37  ;;  %v1417_v26 = vadd.f32 %v1379_v31, %v1257_v59  ;;  %v3707_v37 = vmax.f32 %v3096_v29, 0.0  ;;  %v1263_v31 = vmul.f32 %v3269_v5, %v3708_v60  ;;  %v3710_v29 = vmax.f32 %v3090_v25, 0.0 }
 0x2e3   : > { %v1416_v16 = vadd.f32 %v1377_v34, %v1256_v63  ;;  %v3713_v25 = vmax.f32 %v3109_v4, 0.0 }
 0x2e4   : > { %v1262_v6 = vmul.f32 %v3272_v14, %v3707_v37 }
 0x2e5   : > { %v1383_v24 = vpop.permute.xlu0 %1382  ;;  %2293 = vmatprep.mubr.msk.f32.mxu1 %vm633_vm1, %v1416_v16  ;;  %v3709_v16 = vld [vmem:[#allocation6_spill] sm:$0xff] }
 0x2e6   : > { %v1381_v45 = vpop.permute.xlu1 %1380  ;;  %2294 = vmatmul.mubr.msk.f32.gmra.mrb[16].mxu1 %vm633_vm1, %v1417_v26  ;;  %v1419_v57 = vadd.f32 %v1383_v24, %v1259_v19  ;;  %v843_v26 = vmul.f32 %v3710_v29, %v3709_v16  ;;  %v3723_v29 = vld [vmem:[#allocation8_spill] sm:$0xff] }
 0x2e7   : > { %v1418_v27 = vadd.f32 %v1381_v45, %v1258_v3  ;;  %v844_v3 = vmul.f32 %v3711_v47, %v2676_v50  ;;  %v3712_v45 = vmax.f32 %v3117_v13, 0.0  ;;  %v3715_v13 = vmax.f32 %v3130_v58, 0.0 }
 0x2e9   : > { %v1387_v28 = vpop.permute.xlu0 %1386  ;;  %2296 = vmatprep.mubr.msk.f32.mxu1 %vm633_vm1, %v1418_v27  ;;  %v845_v27 = vmul.f32 %v3712_v45, %v2685_v52  ;;  %v848_v52 = vmul.f32 %v3715_v13, %v2699_v56  ;;  %v3729_v45 = vld [vmem:[#allocation10_spill] sm:$0xff] }
 0x2ea   : > { %v1385_v38 = vpop.permute.xlu1 %1384  ;;  %2297 = vmatmul.mubr.msk.f32.gmra.mrb[18].mxu1 %vm633_vm1, %v1419_v57  ;;  %v1421_v10 = vadd.f32 %v1387_v28, %v1261_v1  ;;  %v846_v57 = vmul.f32 %v3713_v25, %v2770_v44  ;;  %v3714_v28 = vmax.f32 %v3138_v11, 0.0  ;;  %v3717_v11 = vmax.f32 %v3148_v18, 0.0 }
 0x2eb   : > { %v1420_v49 = vadd.f32 %v1385_v38, %v1260_v32 }
 0x2ec   : > { %v847_v21 = vmul.f32 %v3714_v28, %v2693_v23  ;;  %v850_v23 = vmul.f32 %v3717_v11, %v2715_v20  ;;  %v3732_v28 = vld [vmem:[#allocation11_spill] sm:$0xff] }
 0x2ed   : > { %v1391_v63 = vpop.permute.xlu0 %1390  ;;  %2299 = vmatprep.mubr.msk.f32.mxu1 %vm633_vm1, %v1420_v49  ;;  %v3716_v49 = vmax.f32 %v3156_v12, 0.0 }
 0x2ee   : > { %v1389_v8 = vpop.permute.xlu1 %1388  ;;  %2300 = vmatmul.mubr.msk.f32.gmra.mrb[20].mxu1 %vm633_vm1, %v1421_v10  ;;  %v1423_v59 = vadd.f32 %v1391_v63, %v1263_v31  ;;  %v3718_v63 = vmax.f32 %v3180_v46, 0.0 }
 0x2ef   : > { %v1422_v0 = vadd.f32 %v1389_v8, %v1262_v6  ;;  %v849_v10 = vmul.f32 %v3716_v49, %v2773_v35  ;;  %v3719_v35 = vmax.f32 %v3177_v30, 0.0 }
 0x2f0   : > { %v851_v60 = vmul.f32 %v3718_v63, %v2851_v42  ;;  %v3738_v63 = vld [vmem:[#allocation16_spill] sm:$0xff] }
 0x2f1   : > { %v894_v34 = vpop.permute.xlu0 %893  ;;  %2302 = vmatprep.mubr.msk.f32.mxu1 %vm633_vm1, %v1422_v0  ;;  %v852_v12 = vmul.f32 %v3719_v35, %v2849_v15  ;;  %v3720_v0 = vld [vmem:[#allocation7_spill] sm:$0xff]  ;;  %v3739_v35 = vld [vmem:[#allocation13_spill] sm:$0xff] }
 0x2f2   : > { %2303 = vmatmul.mubr.msk.f32.gmra.mrb[22].mxu1 %vm633_vm1, %v1423_v59  ;;  %v892_v39 = vpop.permute.xlu1 %891  ;;  %v940_v53 = vadd.f32 %v894_v34, %v844_v3  ;;  %v3721_v59 = vld [vmem:[#allocation30_spill] sm:$0xff] }
 0x2f3   : > { %v939_v24 = vadd.f32 %v892_v39, %v843_v26  ;;  %v3722_v34 = vmax.f32 %v3721_v59, 0.0  ;;  %v3724_v26 = vld [vmem:[#allocation29_spill] sm:$0xff] }
 0x2f4   : > { %v3725_v47 = vmax.f32 %v3724_v26, 0.0  ;;  %v3726_v39 = vld [vmem:[#allocation9_spill] sm:$0xff] }
 0x2f5   : > { %v898_v19 = vpop.permute.xlu0 %897  ;;  %2309 = vmatprep.mubr.msk.f32.mxu1 %vm633_vm1, %v939_v24  ;;  %v853_v16 = vmul.f32 %v3722_v34, %v3720_v0  ;;  %v3727_v24 = vld [vmem:[#allocation2_spill] sm:$0xff]  ;;  %v3740_v0 = vld [vmem:[#allocation15_spill] sm:$0xff] }
 0x2f6   : > { %v896_v17 = vpop.permute.xlu1 %895  ;;  %2310 = vmatmul.mubr.msk.f32.vlgmr.msra.gmra.mrb[8].mxu1 %vm633_vm1, %v940_v53  ;;  %v942_v7 = vadd.f32 %v898_v19, %v846_v57  ;;  %v854_v3 = vmul.f32 %v3725_v47, %v3723_v29  ;;  %v3728_v53 = vmax.f32 %v3727_v24, 0.0  ;;  %v3741_v34 = vld [vmem:[#allocation14_spill] sm:$0xff] }
 0x2f7   : > { %v941_v50 = vadd.f32 %v896_v17, %v845_v27  ;;  %v3730_v27 = vld [vmem:[#allocation31_spill] sm:$0xff] }
 0x2f8   : > { %v855_v19 = vmul.f32 %v3728_v53, %v3726_v39  ;;  %v3731_v25 = vmax.f32 %v3730_v27, 0.0 }
 0x2f9   : > { %v902_v32 = vpop.permute.xlu0 %901  ;;  %2312 = vmatprep.mubr.msk.f32.mxu1 %vm633_vm1, %v941_v50 }
 0x2fa   : > { %v900_v1 = vpop.permute.xlu1 %899  ;;  %2313 = vmatmul.mubr.msk.f32.gmra.mrb[10].mxu1 %vm633_vm1, %v942_v7  ;;  %v944_v4 = vadd.f32 %v902_v32, %v848_v52  ;;  %v856_v57 = vmul.f32 %v3731_v25, %v3729_v45  ;;  %v3744_v45 = vld [vmem:[#allocation19_spill] sm:$0xff]  ;;  %v3745_v25 = vld [vmem:[#allocation20_spill] sm:$0xff] }
 0x2fb   : > { %v943_v44 = vadd.f32 %v900_v1, %v847_v21  ;;  %v3733_v21 = vld [vmem:[#allocation4_spill] sm:$0xff] }
 0x2fc   : > { %v3734_v13 = vmax.f32 %v3733_v21, 0.0  ;;  %v3735_v1 = vld [vmem:[#allocation12_spill] sm:$0xff] }
 0x2fd   : > { %v906_v38 = vpop.permute.xlu0 %905  ;;  %2315 = vmatprep.mubr.msk.f32.mxu1 %vm633_vm1, %v943_v44  ;;  %v3736_v44 = vld [vmem:[#allocation3_spill] sm:$0xff] }
 0x2fe   : > { %v904_v37 = vpop.permute.xlu1 %903  ;;  %2316 = vmatmul.mubr.msk.f32.gmra.mrb[12].mxu1 %vm633_vm1, %v944_v4  ;;  %v946_v58 = vadd.f32 %v906_v38, %v850_v23  ;;  %v857_v52 = vmul.f32 %v3734_v13, %v3732_v28  ;;  %v3737_v4 = vmax.f32 %v3736_v44, 0.0  ;;  %v2106_v23 = vld [vmem:[%s3561_s1 + $0x43] ss:$0 sm:$0xff]  ;;  %v3746_v28 = vld [vmem:[#allocation21_spill] sm:$0xff] }
 0x2ff   : > { %v945_v56 = vadd.f32 %v904_v37, %v849_v10  ;;  %v3747_v13 = vld [vmem:[#allocation22_spill] sm:$0xff] }
 0x300   : > { %v858_v38 = vmul.f32 %v3737_v4, %v3735_v1 }
 0x301   : > { %2318 = vmatprep.mubr.msk.f32.mxu1 %vm633_vm1, %v945_v56 }
 0x302   : > { %v910_v6 = vpop.permute.xlu0 %909  ;;  %2319 = vmatmul.mubr.msk.f32.gmra.mrb[14].mxu1 %vm633_vm1, %v946_v58 }
 0x303   : > { %v908_v18 = vpop.permute.xlu1 %907  ;;  %v948_v31 = vadd.f32 %v910_v6, %v852_v12 }
 0x304   : > { %v947_v20 = vadd.f32 %v908_v18, %v851_v60 }
 0x306   : > { %v914_v8 = vpop.permute.xlu0 %913  ;;  %2321 = vmatprep.mubr.msk.f32.mxu1 %vm633_vm1, %v947_v20 }
 0x307   : > { %v912_v46 = vpop.permute.xlu1 %911  ;;  %2322 = vmatmul.mubr.msk.f32.gmra.mrb[16].mxu1 %vm633_vm1, %v948_v31  ;;  %v950_v30 = vadd.f32 %v914_v8, %v854_v3 }
 0x308   : > { %v949_v42 = vadd.f32 %v912_v46, %v853_v16  ;;  %v3742_v46 = vld [vmem:[#allocation17_spill] sm:$0xff] }
 0x30a   : > { %v918_v15 = vpop.permute.xlu0 %917  ;;  %2324 = vmatprep.mubr.msk.f32.mxu1 %vm633_vm1, %v949_v42 }
 0x30b   : > { %v916_v17 = vpop.permute.xlu1 %915  ;;  %2325 = vmatmul.mubr.msk.f32.gmra.mrb[18].mxu1 %vm633_vm1, %v950_v30  ;;  %v952_v7 = vadd.f32 %v918_v15, %v856_v57  ;;  %v3743_v30 = vld [vmem:[#allocation18_spill] sm:$0xff] }
 0x30c   : > { %v951_v50 = vadd.f32 %v916_v17, %v855_v19 }
 0x30e   : > { %2327 = vmatprep.mubr.msk.f32.mxu1 %vm633_vm1, %v951_v50 }
 0x30f   : > { %2328 = vmatmul.mubr.msk.f32.gmra.mrb[20].mxu1 %vm633_vm1, %v952_v7 }
 0x33e   : > { %v922_v32 = vpop.permute.xlu0 %921 }
 0x33f   : > { %v920_v49 = vpop.permute.xlu1 %919  ;;  %v954_v11 = vadd.f32 %v922_v32, %v858_v38 }
 0x340   : > { %v953_v10 = vadd.f32 %v920_v49, %v857_v52  ;;  %v3748_v49 = vld [vmem:[#allocation23_spill] sm:$0xff] }
 0x342   : > { %2330 = vmatprep.mubr.msk.f32.mxu1 %vm633_vm1, %v953_v10 }
 0x343   : > { %2331 = vmatmul.mubr.msk.f32.gmra.mrb[22].mxu1 %vm633_vm1, %v954_v11  ;;  %v3749_v11 = vld [vmem:[#allocation24_spill] sm:$0xff] }
 0x3c9   : > { %v2311_v37 = vpop.f32.mrb[8].mxu1 }
 0x3ca   : > { %v3406_v56 = vadd.f32 %v2311_v37, %v2106_v23  ;;  %v1731_v58 = vpop.f32.mrb[9].mxu1 }
 0x3cb   : > { %v3408_v6 = vadd.f32 %v2106_v23, %v1731_v58 }
 0x3cc   : > { %v1847_v60 = vmul.f32 %v3406_v56, %v3738_v63 }
 0x3cd   : > { %v1846_v12 = vmul.f32 %v3408_v6, %v3739_v35  ;;  %v2314_v18 = vpop.f32.mrb[10].mxu1 }
 0x3ce   : > { %v3414_v20 = vadd.f32 %v2314_v18, %v2106_v23  ;;  %1880 = vrot.lane.b32.xlu0 %v1847_v60, %s2402_s24  ;;  %v1741_v31 = vpop.f32.mrb[11].mxu1 }
 0x3cf   : > { %v3417_v8 = vadd.f32 %v2106_v23, %v1741_v31  ;;  %1878 = vrot.lane.b32.xlu1 %v1846_v12, %s2402_s24  ;;  %v3750_v12 = vld [vmem:[#allocation25_spill] sm:$0xff]  ;;  %v3751_v31 = vld [vmem:[#allocation26_spill] sm:$0xff] }
 0x3d0   : > { %v1849_v59 = vmul.f32 %v3414_v20, %v3740_v0 }
 0x3d1   : > { %v1848_v16 = vmul.f32 %v3417_v8, %v3741_v34  ;;  %v2317_v29 = vpop.f32.mrb[12].mxu1 }
 0x3d2   : > { %v3424_v26 = vadd.f32 %v2317_v29, %v2106_v23  ;;  %1884 = vrot.lane.b32.xlu0 %v1849_v59, %s2402_s24  ;;  %v1751_v47 = vpop.f32.mrb[13].mxu1 }
 0x3d3   : > { %v3427_v3 = vadd.f32 %v2106_v23, %v1751_v47  ;;  %1882 = vrot.lane.b32.xlu1 %v1848_v16, %s2402_s24  ;;  %v3752_v47 = vld [vmem:[#allocation27_spill] sm:$0xff] }
 0x3d4   : > { %v1851_v42 = vmul.f32 %v3424_v26, %v3742_v46 }
 0x3d5   : > { %v1850_v15 = vmul.f32 %v3427_v3, %v3743_v30  ;;  %v2320_v39 = vpop.f32.mrb[14].mxu1 }
 0x3d6   : > { %v3434_v24 = vadd.f32 %v2320_v39, %v2106_v23  ;;  %1888 = vrot.lane.b32.xlu0 %v1851_v42, %s2402_s24  ;;  %v1761_v53 = vpop.f32.mrb[15].mxu1  ;;  %v3753_v42 = vld [vmem:[#allocation28_spill] sm:$0xff]  ;;  %v1830_v39 = vmul.f32 %v3408_v6, %v3226_v36  ;;  %v1835_v36 = vmul.f32 %v3424_v26, %v3234_v9  ;;  %v1834_v6 = vmul.f32 %v3427_v3, %v3236_v40 }
 0x3d7   : > { %v3437_v19 = vadd.f32 %v2106_v23, %v1761_v53  ;;  %1886 = vrot.lane.b32.xlu1 %v1850_v15, %s2402_s24  ;;  %v1831_v15 = vmul.f32 %v3406_v56, %v3228_v54  ;;  %v1833_v54 = vmul.f32 %v3414_v20, %v3230_v41 }
 0x3d8   : > { %v1853_v27 = vmul.f32 %v3434_v24, %v3744_v45 }
 0x3d9   : > { %v1852_v57 = vmul.f32 %v3437_v19, %v3745_v25  ;;  %v1832_v25 = vmul.f32 %v3417_v8, %v3232_v51  ;;  %v1837_v51 = vmul.f32 %v3434_v24, %v3238_v61  ;;  %v1836_v8 = vmul.f32 %v3437_v19, %v3240_v62 }
 0x3da   : > { %1892 = vrot.lane.b32.xlu0 %v1853_v27, %s2402_s24  ;;  %v2323_v17 = vpop.f32.mrb[16].mxu1 }
 0x3db   : > { %v3445_v50 = vadd.f32 %v2323_v17, %v2106_v23  ;;  %1890 = vrot.lane.b32.xlu1 %v1852_v57, %s2402_s24  ;;  %v1771_v7 = vpop.f32.mrb[17].mxu1 }
 0x3dc   : > { %v3448_v32 = vadd.f32 %v2106_v23, %v1771_v7 }
 0x3dd   : > { %v1855_v21 = vmul.f32 %v3445_v50, %v3746_v28  ;;  %v1839_v40 = vmul.f32 %v3445_v50, %v3242_v48 }
 0x3de   : > { %v1854_v52 = vmul.f32 %v3448_v32, %v3747_v13  ;;  %v2326_v1 = vpop.f32.mrb[18].mxu1  ;;  %v1838_v3 = vmul.f32 %v3448_v32, %v3244_v43 }
 0x3df   : > { %v3454_v44 = vadd.f32 %v2326_v1, %v2106_v23  ;;  %1896 = vrot.lane.b32.xlu0 %v1855_v21, %s2402_s24  ;;  %v1781_v4 = vpop.f32.mrb[19].mxu1 }
 0x3e0   : > { %v3457_v38 = vadd.f32 %v2106_v23, %v1781_v4  ;;  %1894 = vrot.lane.b32.xlu1 %v1854_v52, %s2402_s24 }
 0x3e1   : > { %v1857_v10 = vmul.f32 %v3454_v44, %v3748_v49  ;;  %v1841_v62 = vmul.f32 %v3454_v44, %v3246_v55 }
 0x3e2   : > { %v1856_v37 = vmul.f32 %v3457_v38, %v3749_v11  ;;  %v2329_v58 = vpop.f32.mrb[20].mxu1  ;;  %v1840_v48 = vmul.f32 %v3457_v38, %v3248_v22 }
 0x3e3   : > { %v3464_v63 = vadd.f32 %v2329_v58, %v2106_v23  ;;  %1900 = vrot.lane.b32.xlu0 %v1857_v10, %s2402_s24  ;;  %v1791_v60 = vpop.f32.mrb[21].mxu1 }
 0x3e4   : > { %v3467_v35 = vadd.f32 %v2106_v23, %v1791_v60  ;;  %1898 = vrot.lane.b32.xlu1 %v1856_v37, %s2402_s24 }
 0x3e5   : > { %v1859_v18 = vmul.f32 %v3464_v63, %v3750_v12  ;;  %v1843_v43 = vmul.f32 %v3464_v63, %v3253_v33 }
 0x3e6   : > { %v1858_v0 = vmul.f32 %v3467_v35, %v3751_v31  ;;  %v1842_v32 = vmul.f32 %v3467_v35, %v3258_v2 }
 0x3e7   : > { %1904 = vrot.lane.b32.xlu0 %v1859_v18, %s2402_s24 }
 0x3e8   : > { %1902 = vrot.lane.b32.xlu1 %v1858_v0, %s2402_s24 }
 0x416   : > { %v2332_v59 = vpop.f32.mrb[22].mxu1 }
 0x417   : > { %v3476_v34 = vadd.f32 %v2332_v59, %v2106_v23  ;;  %v1801_v16 = vpop.f32.mrb[23].mxu1 }
 0x418   : > { %v3478_v29 = vadd.f32 %v2106_v23, %v1801_v16 }
 0x419   : > { %v1861_v46 = vmul.f32 %v3476_v34, %v3752_v47  ;;  %v1845_v22 = vmul.f32 %v3476_v34, %v3269_v5 }
 0x41a   : > { %v1860_v30 = vmul.f32 %v3478_v29, %v3753_v42  ;;  %v1844_v33 = vmul.f32 %v3478_v29, %v3272_v14 }
 0x41b   : > { %1908 = vrot.lane.b32.xlu0 %v1861_v46, %s2402_s24 }
 0x41c   : > { %1906 = vrot.lane.b32.xlu1 %v1860_v30, %s2402_s24 }
 0x440   : > { %v1881_v23 = vpop.permute.xlu0 %1880 }
 0x441   : > { %v1927_v53 = vadd.f32 %v1881_v23, %v1831_v15  ;;  %v1879_v45 = vpop.permute.xlu1 %1878 }
 0x442   : > { %v1926_v27 = vadd.f32 %v1879_v45, %v1830_v39 }
 0x443   : > { %1943 = vst.msk [vmem:[%s3493_s19 + $0x8] sm:$0xff] %vm633_vm1, %v1927_v53 }
 0x444   : > { %1942 = vst.msk [vmem:[%s3493_s19] sm:$0xff] %vm633_vm1, %v1926_v27  ;;  %v1885_v56 = vpop.permute.xlu0 %1884 }
 0x445   : > { %v1929_v57 = vadd.f32 %v1885_v56, %v1833_v54  ;;  %v1883_v17 = vpop.permute.xlu1 %1882 }
 0x446   : > { %v1928_v7 = vadd.f32 %v1883_v17, %v1832_v25 }
 0x447   : > { %1945 = vst.msk [vmem:[%s3493_s19 + $0x18] sm:$0xff] %vm633_vm1, %v1929_v57 }
 0x448   : > { %1944 = vst.msk [vmem:[%s3493_s19 + $0x10] sm:$0xff] %vm633_vm1, %v1928_v7  ;;  %v1889_v41 = vpop.permute.xlu0 %1888 }
 0x449   : > { %v1931_v20 = vadd.f32 %v1889_v41, %v1835_v36  ;;  %v1887_v28 = vpop.permute.xlu1 %1886 }
 0x44a   : > { %v1930_v21 = vadd.f32 %v1887_v28, %v1834_v6 }
 0x44b   : > { %1947 = vst.msk [vmem:[%s3493_s19 + $0x28] sm:$0xff] %vm633_vm1, %v1931_v20 }
 0x44c   : > { %1946 = vst.msk [vmem:[%s3493_s19 + $0x20] sm:$0xff] %vm633_vm1, %v1930_v21  ;;  %v1893_v9 = vpop.permute.xlu0 %1892 }
 0x44d   : > { %v1933_v26 = vadd.f32 %v1893_v9, %v1837_v51  ;;  %v1891_v13 = vpop.permute.xlu1 %1890 }
 0x44e   : > { %v1932_v52 = vadd.f32 %v1891_v13, %v1836_v8 }
 0x44f   : > { %1949 = vst.msk [vmem:[%s3493_s19 + $0x38] sm:$0xff] %vm633_vm1, %v1933_v26 }
 0x450   : > { %1948 = vst.msk [vmem:[%s3493_s19 + $0x30] sm:$0xff] %vm633_vm1, %v1932_v52 }
 0x451   : > { %v1897_v61 = vpop.permute.xlu0 %1896 }
 0x452   : > { %v1935_v24 = vadd.f32 %v1897_v61, %v1839_v40  ;;  %v1895_v1 = vpop.permute.xlu1 %1894 }
 0x453   : > { %v1934_v4 = vadd.f32 %v1895_v1, %v1838_v3 }
 0x454   : > { %1951 = vst.msk [vmem:[%s3493_s19 + $0x48] sm:$0xff] %vm633_vm1, %v1935_v24 }
 0x455   : > { %1950 = vst.msk [vmem:[%s3493_s19 + $0x40] sm:$0xff] %vm633_vm1, %v1934_v4  ;;  %v1901_v19 = vpop.permute.xlu0 %1900 }
 0x456   : > { %v1937_v50 = vadd.f32 %v1901_v19, %v1841_v62  ;;  %v1899_v49 = vpop.permute.xlu1 %1898 }
 0x457   : > { %v1936_v10 = vadd.f32 %v1899_v49, %v1840_v48 }
 0x458   : > { %1953 = vst.msk [vmem:[%s3493_s19 + $0x58] sm:$0xff] %vm633_vm1, %v1937_v50 }
 0x459   : > { %1952 = vst.msk [vmem:[%s3493_s19 + $0x50] sm:$0xff] %vm633_vm1, %v1936_v10  ;;  %v1905_v55 = vpop.permute.xlu0 %1904 }
 0x45a   : > { %v1939_v44 = vadd.f32 %v1905_v55, %v1843_v43  ;;  %v1903_v11 = vpop.permute.xlu1 %1902 }
 0x45b   : > { %v1938_v37 = vadd.f32 %v1903_v11, %v1842_v32 }
 0x45c   : > { %1955 = vst.msk [vmem:[%s3493_s19 + $0x68] sm:$0xff] %vm633_vm1, %v1939_v44 }
 0x45d   : > { %1954 = vst.msk [vmem:[%s3493_s19 + $0x60] sm:$0xff] %vm633_vm1, %v1938_v37 }
 0x48d   : > { %v1909_v38 = vpop.permute.xlu0 %1908 }
 0x48e   : > { %v1941_v58 = vadd.f32 %v1909_v38, %v1845_v22  ;;  %v1907_v63 = vpop.permute.xlu1 %1906 }
 0x48f   : > { %v1940_v60 = vadd.f32 %v1907_v63, %v1844_v33 }
 0x490   : > { %1957 = vst.msk [vmem:[%s3493_s19 + $0x78] sm:$0xff] %vm633_vm1, %v1941_v58 }
 0x491   : > { %1956 = vst.msk [vmem:[%s3493_s19 + $0x70] sm:$0xff] %vm633_vm1, %v1940_v60 }
 0x492 PF: > { %s12_s9 = sadd.s32 1, %s2398_s9  }
 0x493   : > { %p9_p4 = scmp.ge.s32.totalorder %s12_s9, 4  }
 0x495   :  { %11 = sbr.rel (!%p9_p4) target bundleno = 1 (0x1), region = 58 }

</bundles_post_ra>
